<compile_context>
chip_gen: v7x
topology: tpu7x:2x2x1
jax: 0.10.0
libtpu: 0.0.40
codegen_flags: <defaults>
</compile_context>

<pallas_src>
import functools
import math

import jax
import jax.numpy as jnp
import numpy as np
from jax.experimental import pallas as pl
from jax.experimental.pallas import tpu as pltpu


def _attention_kernel(x_ref, wq_ref, wk_ref, wv_ref, wo_ref, bo_ref, o_ref,
                      acc_ref, *, heads, dim_head, seq_valid, seq_pad,
                      batch_block, compute_dtype, approx_recip):
    rows = batch_block * seq_pad
    cdt = compute_dtype

    x = x_ref[...].astype(cdt)                                      # (rows, D)

    # Q/K/V projections: one wide MXU matmul each (f32 accumulate).  Cast
    # eagerly so the f32 intermediates die; the 1/sqrt(dim_head) scale is
    # already folded into Wq (prepare_attention_params).
    q = jnp.dot(x, wq_ref[...].astype(cdt),
                preferred_element_type=jnp.float32).astype(cdt)     # (rows, HDh)
    k = jnp.dot(x, wk_ref[...].astype(cdt),
                preferred_element_type=jnp.float32).astype(cdt)
    v = jnp.dot(x, wv_ref[...].astype(cdt),
                preferred_element_type=jnp.float32).astype(cdt)

    # f32 VMEM scratch accumulator for the per-head output projection
    # (bounds live ranges across the statically unrolled head loop).
    acc_ref[...] = jnp.zeros_like(acc_ref)

    n_padded_keys = seq_pad - seq_valid

    for h in range(heads):                      # static unroll, small count
        lo = h * dim_head
        hi = lo + dim_head
        qh = q[:, lo:hi].reshape(batch_block, seq_pad, dim_head)
        kh = k[:, lo:hi].reshape(batch_block, seq_pad, dim_head)
        vh = v[:, lo:hi].reshape(batch_block, seq_pad, dim_head)

        # scores[b,i,j] = sum_d qh[b,i,d] * kh[b,j,d]   (no kh.T relayout)
        s = jax.lax.dot_general(
            qh, kh, dimension_numbers=(((2,), (2,)), ((0,), (0,))),
            preferred_element_type=jnp.float32)                     # (Bb,Np,Np)

        # Numerically stable softmax in f32.  Padded key columns come from
        # zero-padded x rows and bias-free K/V projections: their scores are
        # exactly 0 and their values exactly 0, so the numerator (p @ v) is
        # untouched and the denominator just drops the padded exp(0 - m)
        # contributions -- an exact correction, no -inf mask needed.
        m = jnp.max(s, axis=-1, keepdims=True)
        p = jnp.exp(s - m)
        denom = jnp.sum(p, axis=-1, keepdims=True)
        if n_padded_keys:
            denom = denom - np.float32(n_padded_keys) * jnp.exp(-m)

        # head_out[b,i,d] = sum_j p[b,i,j] * vh[b,j,d].  Normalize the
        # (Np, Dh) output instead of the (Np, Np) probabilities (far fewer
        # VPU multiplies); the reciprocal runs on the EUP slot.
        oh = jax.lax.dot_general(
            p.astype(cdt), vh, dimension_numbers=(((2,), (1,)), ((0,), (0,))),
            preferred_element_type=jnp.float32)                     # (Bb,Np,Dh)
        oh = oh * pl.reciprocal(denom, approx=approx_recip)

        # Accumulate the output projection per head (no concat relayout).
        acc_ref[...] += jnp.dot(
            oh.astype(cdt).reshape(rows, dim_head),
            wo_ref[lo:hi, :].astype(cdt),
            preferred_element_type=jnp.float32)                     # (rows, D)

    o_ref[...] = (acc_ref[...] + bo_ref[...]).astype(o_ref.dtype)


def prepare_attention_params(wq, wk, wv, wo, bo, *, dim_head):
    """One-time parameter prep: fold the 1/sqrt(dim_head) scale into Wq.

    Done at parameter-prep time (not per call) so the kernel never multiplies
    q by the scale and the wrapper adds no per-call op.
    """
    wq_scaled = (wq / math.sqrt(dim_head)).astype(wq.dtype)
    return wq_scaled, wk, wv, wo, bo


def baseline_attention(x, wq, wk, wv, wo, bo, *, heads, dim_head,
                       block_b=None, seq_multiple=16,
                       compute_dtype=jnp.bfloat16, approx_softmax=True,
                       vmem_limit_bytes=None):
    """Multi-head self-attention forward.

    x: (B, N, D); wq/wk/wv: (D, H*Dh) with the attention scale already folded
    into wq (see prepare_attention_params); wo: (H*Dh, D); bo: (1, D).

    compute_dtype: MXU matmul operand dtype (bf16 default -- best on v6e/v7x;
    accumulation and softmax stay f32; use f32 on v5e if casts bind on VALU).
    approx_softmax: use the EUP approximate reciprocal for the softmax
    normalization (set False for a tighter-precision correctness mode).
    block_b: batch elements per grid step; default picks the largest divisor
    of B giving >=2 grid programs (feeds both v7x TensorCores) that fits the
    per-block VMEM estimate.
    """
    B, N, D = x.shape
    inner = heads * dim_head
    assert wq.shape == (D, inner) and wk.shape == (D, inner) and wv.shape == (D, inner)
    assert wo.shape == (inner, D) and bo.shape == (1, D)

    # Pad the sequence dim to a sublane-clean multiple (e.g. N=197 -> 208).
    seq_multiple = max(int(seq_multiple), 8)
    n_pad = ((N + seq_multiple - 1) // seq_multiple) * seq_multiple
    if n_pad != N:
        x = jnp.pad(x, ((0, 0), (0, n_pad - N), (0, 0)))
    x2 = x.reshape(B * n_pad, D)   # fold batch into rows: one wide matmul per proj

    # Explicit VMEM budget: above v5e's 16 MiB scoped default, below v7x's
    # 64 MiB physical per-TensorCore VMEM, with headroom.
    if vmem_limit_bytes is None:
        try:
            cap = int(pltpu.get_tpu_info().vmem_capacity_bytes)
        except Exception:
            cap = 64 * 1024 * 1024          # v7x per-core VMEM (smallest current)
        vmem_limit_bytes = max(32 * 1024 * 1024,
                               min(cap, 128 * 1024 * 1024) - 8 * 1024 * 1024)
    vmem_limit_bytes = int(vmem_limit_bytes)

    cdt_size = jnp.dtype(compute_dtype).itemsize

    def vmem_estimate(bb):
        # Rough per-block VMEM footprint (single-buffered resident weights).
        rows = bb * n_pad
        f32 = 4
        w = (3 * D * inner + inner * D + D) * f32          # resident weights + bias
        w_cast = (3 * D * inner + inner * D) * cdt_size    # compute-dtype copies
        xb = 2 * rows * D * f32 + rows * D * cdt_size      # double-buffered x + cast
        qkv = 3 * rows * inner * cdt_size                  # eager-cast q/k/v
        sc = 2 * bb * n_pad * n_pad * f32                  # one head's s and p
        ob = bb * n_pad * dim_head * (f32 + cdt_size)      # one head's output
        out = 3 * rows * D * f32                           # acc scratch + 2x out block
        return w + w_cast + xb + qkv + sc + ob + out

    if block_b is None:
        budget = int(0.8 * vmem_limit_bytes)
        divisors = [d for d in range(1, B + 1) if B % d == 0]
        # Prefer >= 2 grid programs (both v7x TensorCores get work; harmless
        # ~0.35us/step on single-TC v5e/v6e), then shrink to fit VMEM.
        preferred = [d for d in sorted(divisors, reverse=True) if B // d >= 2] or [B]
        block_b = next((d for d in preferred if vmem_estimate(d) <= budget), 1)
    assert B % block_b == 0
    num_blocks = B // block_b
    rows_per_block = block_b * n_pad

    kernel = functools.partial(
        _attention_kernel, heads=heads, dim_head=dim_head, seq_valid=N,
        seq_pad=n_pad, batch_block=block_b, compute_dtype=compute_dtype,
        approx_recip=approx_softmax)

    flops = (3 * 2 * B * n_pad * D * inner                 # q/k/v projections
             + 2 * 2 * B * heads * n_pad * n_pad * dim_head  # scores + p@v
             + 2 * B * n_pad * inner * D)                  # output projection
    transcendentals = B * heads * n_pad * n_pad            # exp in softmax
    bytes_accessed = 4 * (2 * B * n_pad * D + 3 * D * inner + inner * D + D)

    def _call(single_buffer_weights):
        def const_spec(shape):
            zero_map = lambda i, _n=len(shape): (0,) * _n
            if single_buffer_weights:
                # Constant index_map -> the weights never need a second buffer.
                return pl.BlockSpec(shape, zero_map, pipeline_mode=pl.Buffered(1))
            return pl.BlockSpec(shape, zero_map)

        return pl.pallas_call(
            kernel,
            out_shape=jax.ShapeDtypeStruct((B * n_pad, D), x.dtype),
            grid=(num_blocks,),
            in_specs=[
                pl.BlockSpec((rows_per_block, D), lambda i: (i, 0)),   # x rows
                const_spec((D, inner)),                                # Wq (scaled)
                const_spec((D, inner)),                                # Wk
                const_spec((D, inner)),                                # Wv
                const_spec((inner, D)),                                # Wo
                const_spec((1, D)),                                    # bo
            ],
            out_specs=pl.BlockSpec((rows_per_block, D), lambda i: (i, 0)),
            scratch_shapes=[pltpu.VMEM((rows_per_block, D), jnp.float32)],
            compiler_params=pltpu.CompilerParams(
                dimension_semantics=("parallel",),
                vmem_limit_bytes=vmem_limit_bytes),
            cost_estimate=pl.CostEstimate(
                flops=flops, transcendentals=transcendentals,
                bytes_accessed=bytes_accessed),
        )(x2, wq, wk, wv, wo, bo)

    try:
        out2 = _call(single_buffer_weights=True)
    except Exception:
        # pl.Buffered(1) (single-buffered resident weights) unsupported on
        # this jax version: fall back to default double-buffering (costs only
        # VMEM, not correctness).
        out2 = _call(single_buffer_weights=False)

    out = out2.reshape(B, n_pad, D)
    return out[:, :N, :] if n_pad != N else out


def baseline_attention_ref_np(x, wq, wk, wv, wo, bo, *, heads, dim_head):
    """float64 NumPy reference matching the PyTorch forward semantics
    (takes the RAW, un-prescaled wq)."""
    x = np.asarray(x, np.float64)
    wq = np.asarray(wq, np.float64)
    wk = np.asarray(wk, np.float64)
    wv = np.asarray(wv, np.float64)
    wo = np.asarray(wo, np.float64)
    bo = np.asarray(bo, np.float64)
    B, N, _ = x.shape
    q, k, v = x @ wq, x @ wk, x @ wv

    def split(t):   # 'b n (h d) -> b h n d'
        return t.reshape(B, N, heads, dim_head).transpose(0, 2, 1, 3)

    q, k, v = split(q), split(k), split(v)
    s = np.einsum("bhnd,bhmd->bhnm", q, k) / math.sqrt(dim_head)
    s = s - s.max(-1, keepdims=True)
    p = np.exp(s)
    p = p / p.sum(-1, keepdims=True)
    o = np.einsum("bhnm,bhmd->bhnd", p, v)
    o = o.transpose(0, 2, 1, 3).reshape(B, N, heads * dim_head)
    return o @ wo + bo


def _make_case(B, N, D, heads, dim_head, seed):
    inner = heads * dim_head
    key = jax.random.PRNGKey(seed)
    kx, kq, kk, kv, kw, kb = jax.random.split(key, 6)
    x = jax.random.normal(kx, (B, N, D), jnp.float32)
    xav = math.sqrt(2.0 / (D + inner))                     # xavier-normal std
    wq = jax.random.normal(kq, (D, inner), jnp.float32) * xav
    wk = jax.random.normal(kk, (D, inner), jnp.float32) * xav
    wv = jax.random.normal(kv, (D, inner), jnp.float32) * xav
    wo = jax.random.normal(kw, (inner, D), jnp.float32) * math.sqrt(1.0 / inner)
    bo = (jax.random.uniform(kb, (1, D), jnp.float32) - 0.5) * 2.0 * math.sqrt(1.0 / inner)
    ref = baseline_attention_ref_np(x, wq, wk, wv, wo, bo,
                                    heads=heads, dim_head=dim_head)
    params = prepare_attention_params(wq, wk, wv, wo, bo, dim_head=dim_head)
    return x, params, ref


if __name__ == "__main__":
    # Case A: tiny ViT-ish shapes.  N=8 is deliberately not a multiple of the
    # 16-row sequence padding, so the pad + denominator-correction path runs.
    B, N, D, heads, dim_head = 2, 8, 32, 4, 16
    x, params, ref = _make_case(B, N, D, heads, dim_head, seed=0)

    # Default fast path: bf16 MXU operands + EUP approximate reciprocal.
    out_fast = jax.block_until_ready(
        baseline_attention(x, *params, heads=heads, dim_head=dim_head))
    np.testing.assert_allclose(np.asarray(out_fast, np.float64), ref,
                               rtol=5e-2, atol=5e-2)

    # Precise mode (review's correctness concern): f32 operands, exact recip.
    out_precise = jax.block_until_ready(
        baseline_attention(x, *params, heads=heads, dim_head=dim_head,
                           compute_dtype=jnp.float32, approx_softmax=False))
    np.testing.assert_allclose(np.asarray(out_precise, np.float64), ref,
                               rtol=2e-2, atol=2e-2)

    # Tight logic check (head indexing / padding / bias) on the CPU TPU
    # emulator where f32 matmuls are exact; silently skipped if the emulator
    # is unavailable on this jax build.
    out_interp = None
    try:
        with pltpu.force_tpu_interpret_mode():
            out_interp = baseline_attention(
                x, *params, heads=heads, dim_head=dim_head,
                compute_dtype=jnp.float32, approx_softmax=False)
        out_interp = np.asarray(jax.block_until_ready(out_interp), np.float64)
    except Exception:
        out_interp = None
    if out_interp is not None:
        np.testing.assert_allclose(out_interp, ref, rtol=1e-4, atol=1e-5)

    # Case B: ViT-default head width (dim_head=64), aligned N (no padding).
    B2, N2, D2, heads2, dh2 = 2, 16, 64, 4, 64
    x_b, params_b, ref_b = _make_case(B2, N2, D2, heads2, dh2, seed=1)
    out_b = jax.block_until_ready(
        baseline_attention(x_b, *params_b, heads=heads2, dim_head=dh2))
    np.testing.assert_allclose(np.asarray(out_b, np.float64), ref_b,
                               rtol=5e-2, atol=5e-2)

    print("KERNEL_OK")
</pallas_src>

<mosaic_0001>
module attributes {stable_mosaic.version = 11 : i64} {
  func.func @_attention_kernel(%arg0: i32, %arg1: memref<16x32xf32, #tpu.memory_space<vmem>>, %arg2: memref<32x64xf32, #tpu.memory_space<vmem>>, %arg3: memref<32x64xf32, #tpu.memory_space<vmem>>, %arg4: memref<32x64xf32, #tpu.memory_space<vmem>>, %arg5: memref<64x32xf32, #tpu.memory_space<vmem>>, %arg6: memref<1x32xf32, #tpu.memory_space<vmem>>, %arg7: memref<16x32xf32, #tpu.memory_space<vmem>>, %arg8: memref<16x32xf32, #tpu.memory_space<vmem>>) attributes {dimension_semantics = [#tpu.dimension_semantics<parallel>], iteration_bounds = array<i64: 2>, scalar_prefetch = 0 : i64, scratch_operands = 1 : i64, tpu.core_type = #tpu.core_type<tc>, window_params = [{transform_indices = @transform_0, window_bounds = array<i64: 16, 32>}, {pipeline_mode = #tpu.pipeline_mode<synchronous>, transform_indices = @transform_1, window_bounds = array<i64: 32, 64>}, {pipeline_mode = #tpu.pipeline_mode<synchronous>, transform_indices = @transform_2, window_bounds = array<i64: 32, 64>}, {pipeline_mode = #tpu.pipeline_mode<synchronous>, transform_indices = @transform_3, window_bounds = array<i64: 32, 64>}, {pipeline_mode = #tpu.pipeline_mode<synchronous>, transform_indices = @transform_4, window_bounds = array<i64: 64, 32>}, {pipeline_mode = #tpu.pipeline_mode<synchronous>, transform_indices = @transform_5, window_bounds = array<i64: 1, 32>}, {transform_indices = @transform_6, window_bounds = array<i64: 16, 32>}]} {
    %c0 = arith.constant 0 : index
    %c0_0 = arith.constant 0 : index
    %0 = vector.load %arg1[%c0, %c0_0] : memref<16x32xf32, #tpu.memory_space<vmem>>, vector<16x32xf32>
    %1 = arith.truncf %0 : vector<16x32xf32> to vector<16x32xbf16>
    %c0_1 = arith.constant 0 : index
    %c0_2 = arith.constant 0 : index
    %2 = vector.load %arg2[%c0_1, %c0_2] : memref<32x64xf32, #tpu.memory_space<vmem>>, vector<32x64xf32>
    %3 = arith.truncf %2 : vector<32x64xf32> to vector<32x64xbf16>
    %cst = arith.constant dense<0.000000e+00> : vector<16x64xf32>
    %4 = tpu.matmul %1, %3, %cst {dimension_numbers = #tpu.dot_dimension_numbers<[1], [0], [0], [1], [0, 0, 1, 1], [], []>} : vector<16x32xbf16>, vector<32x64xbf16>, vector<16x64xf32> -> vector<16x64xf32>
    %5 = arith.truncf %4 : vector<16x64xf32> to vector<16x64xbf16>
    %c0_3 = arith.constant 0 : index
    %c0_4 = arith.constant 0 : index
    %6 = vector.load %arg3[%c0_3, %c0_4] : memref<32x64xf32, #tpu.memory_space<vmem>>, vector<32x64xf32>
    %7 = arith.truncf %6 : vector<32x64xf32> to vector<32x64xbf16>
    %cst_5 = arith.constant dense<0.000000e+00> : vector<16x64xf32>
    %8 = tpu.matmul %1, %7, %cst_5 {dimension_numbers = #tpu.dot_dimension_numbers<[1], [0], [0], [1], [0, 0, 1, 1], [], []>} : vector<16x32xbf16>, vector<32x64xbf16>, vector<16x64xf32> -> vector<16x64xf32>
    %9 = arith.truncf %8 : vector<16x64xf32> to vector<16x64xbf16>
    %c0_6 = arith.constant 0 : index
    %c0_7 = arith.constant 0 : index
    %10 = vector.load %arg4[%c0_6, %c0_7] : memref<32x64xf32, #tpu.memory_space<vmem>>, vector<32x64xf32>
    %11 = arith.truncf %10 : vector<32x64xf32> to vector<32x64xbf16>
    %cst_8 = arith.constant dense<0.000000e+00> : vector<16x64xf32>
    %12 = tpu.matmul %1, %11, %cst_8 {dimension_numbers = #tpu.dot_dimension_numbers<[1], [0], [0], [1], [0, 0, 1, 1], [], []>} : vector<16x32xbf16>, vector<32x64xbf16>, vector<16x64xf32> -> vector<16x64xf32>
    %13 = arith.truncf %12 : vector<16x64xf32> to vector<16x64xbf16>
    %cst_9 = arith.constant 0.000000e+00 : f32
    %14 = vector.broadcast %cst_9 : f32 to vector<16x32xf32>
    %c0_10 = arith.constant 0 : index
    %c0_11 = arith.constant 0 : index
    %15 = vector.load %arg8[%c0_10, %c0_11] : memref<16x32xf32, #tpu.memory_space<vmem>>, vector<16x32xf32>
    tpu.vector_store %arg8[%c0_10, %c0_11], %14 {strides = array<i32>} : memref<16x32xf32, #tpu.memory_space<vmem>>, vector<16x32xf32>,
    %16 = vector.extract_strided_slice %5 {offsets = [0, 0], sizes = [16, 16], strides = [1, 1]} : vector<16x64xbf16> to vector<16x16xbf16>
    %17 = vector.shape_cast %16 : vector<16x16xbf16> to vector<1x16x16xbf16>
    %18 = vector.extract_strided_slice %9 {offsets = [0, 0], sizes = [16, 16], strides = [1, 1]} : vector<16x64xbf16> to vector<16x16xbf16>
    %19 = vector.shape_cast %18 : vector<16x16xbf16> to vector<1x16x16xbf16>
    %20 = vector.extract_strided_slice %13 {offsets = [0, 0], sizes = [16, 16], strides = [1, 1]} : vector<16x64xbf16> to vector<16x16xbf16>
    %21 = vector.shape_cast %20 : vector<16x16xbf16> to vector<1x16x16xbf16>
    %cst_12 = arith.constant dense<0.000000e+00> : vector<1x16x16xf32>
    %22 = tpu.matmul %17, %19, %cst_12 {dimension_numbers = #tpu.dot_dimension_numbers<[2], [2], [1], [1], [0, 0, 0, 1, 1, 1], [0], [0]>} : vector<1x16x16xbf16>, vector<1x16x16xbf16>, vector<1x16x16xf32> -> vector<1x16x16xf32>
    %cst_13 = arith.constant dense<0xFF800000> : vector<1x16xf32>
    %23 = vector.multi_reduction <maximumf>, %22, %cst_13 [2] : vector<1x16x16xf32> to vector<1x16xf32>
    %24 = vector.shape_cast %23 : vector<1x16xf32> to vector<1x16x1xf32>
    %25 = vector.broadcast %24 : vector<1x16x1xf32> to vector<1x16x16xf32>
    %26 = arith.subf %22, %25 : vector<1x16x16xf32>
    %27 = math.exp %26 : vector<1x16x16xf32>
    %cst_14 = arith.constant dense<0.000000e+00> : vector<1x16xf32>
    %28 = vector.multi_reduction <add>, %27, %cst_14 [2] : vector<1x16x16xf32> to vector<1x16xf32>
    %29 = vector.shape_cast %28 : vector<1x16xf32> to vector<1x16x1xf32>
    %cst_15 = arith.constant 0.000000e+00 : f32
    %30 = vector.broadcast %cst_15 : f32 to vector<1x16x1xf32>
    %31 = arith.subf %30, %24 : vector<1x16x1xf32>
    %32 = math.exp %31 : vector<1x16x1xf32>
    %cst_16 = arith.constant 8.000000e+00 : f32
    %33 = vector.broadcast %cst_16 : f32 to vector<1x16x1xf32>
    %34 = arith.mulf %33, %32 : vector<1x16x1xf32>
    %35 = arith.subf %29, %34 : vector<1x16x1xf32>
    %36 = arith.truncf %27 : vector<1x16x16xf32> to vector<1x16x16xbf16>
    %cst_17 = arith.constant dense<0.000000e+00> : vector<1x16x16xf32>
    %37 = tpu.matmul %36, %21, %cst_17 {dimension_numbers = #tpu.dot_dimension_numbers<[2], [1], [1], [2], [0, 0, 0, 1, 1, 2], [0], [0]>} : vector<1x16x16xbf16>, vector<1x16x16xbf16>, vector<1x16x16xf32> -> vector<1x16x16xf32>
    %38 = tpu.reciprocal %35 {approx = true} : vector<1x16x1xf32> -> vector<1x16x1xf32>
    %39 = vector.broadcast %38 : vector<1x16x1xf32> to vector<1x16x16xf32>
    %40 = arith.mulf %37, %39 : vector<1x16x16xf32>
    %c0_18 = arith.constant 0 : index
    %c0_19 = arith.constant 0 : index
    %41 = vector.load %arg8[%c0_18, %c0_19] : memref<16x32xf32, #tpu.memory_space<vmem>>, vector<16x32xf32>
    %42 = arith.truncf %40 : vector<1x16x16xf32> to vector<1x16x16xbf16>
    %43 = vector.shape_cast %42 : vector<1x16x16xbf16> to vector<16x16xbf16>
    %c0_20 = arith.constant 0 : index
    %c0_21 = arith.constant 0 : index
    %44 = vector.load %arg5[%c0_20, %c0_21] : memref<64x32xf32, #tpu.memory_space<vmem>>, vector<16x32xf32>
    %45 = arith.truncf %44 : vector<16x32xf32> to vector<16x32xbf16>
    %cst_22 = arith.constant dense<0.000000e+00> : vector<16x32xf32>
    %46 = tpu.matmul %43, %45, %cst_22 {dimension_numbers = #tpu.dot_dimension_numbers<[1], [0], [0], [1], [0, 0, 1, 1], [], []>} : vector<16x16xbf16>, vector<16x32xbf16>, vector<16x32xf32> -> vector<16x32xf32>
    %47 = arith.addf %41, %46 : vector<16x32xf32>
    %c0_23 = arith.constant 0 : index
    %c0_24 = arith.constant 0 : index
    %48 = vector.load %arg8[%c0_23, %c0_24] : memref<16x32xf32, #tpu.memory_space<vmem>>, vector<16x32xf32>
    tpu.vector_store %arg8[%c0_23, %c0_24], %47 {strides = array<i32>} : memref<16x32xf32, #tpu.memory_space<vmem>>, vector<16x32xf32>,
    %49 = vector.extract_strided_slice %5 {offsets = [0, 16], sizes = [16, 16], strides = [1, 1]} : vector<16x64xbf16> to vector<16x16xbf16>
    %50 = vector.shape_cast %49 : vector<16x16xbf16> to vector<1x16x16xbf16>
    %51 = vector.extract_strided_slice %9 {offsets = [0, 16], sizes = [16, 16], strides = [1, 1]} : vector<16x64xbf16> to vector<16x16xbf16>
    %52 = vector.shape_cast %51 : vector<16x16xbf16> to vector<1x16x16xbf16>
    %53 = vector.extract_strided_slice %13 {offsets = [0, 16], sizes = [16, 16], strides = [1, 1]} : vector<16x64xbf16> to vector<16x16xbf16>
    %54 = vector.shape_cast %53 : vector<16x16xbf16> to vector<1x16x16xbf16>
    %cst_25 = arith.constant dense<0.000000e+00> : vector<1x16x16xf32>
    %55 = tpu.matmul %50, %52, %cst_25 {dimension_numbers = #tpu.dot_dimension_numbers<[2], [2], [1], [1], [0, 0, 0, 1, 1, 1], [0], [0]>} : vector<1x16x16xbf16>, vector<1x16x16xbf16>, vector<1x16x16xf32> -> vector<1x16x16xf32>
    %cst_26 = arith.constant dense<0xFF800000> : vector<1x16xf32>
    %56 = vector.multi_reduction <maximumf>, %55, %cst_26 [2] : vector<1x16x16xf32> to vector<1x16xf32>
    %57 = vector.shape_cast %56 : vector<1x16xf32> to vector<1x16x1xf32>
    %58 = vector.broadcast %57 : vector<1x16x1xf32> to vector<1x16x16xf32>
    %59 = arith.subf %55, %58 : vector<1x16x16xf32>
    %60 = math.exp %59 : vector<1x16x16xf32>
    %cst_27 = arith.constant dense<0.000000e+00> : vector<1x16xf32>
    %61 = vector.multi_reduction <add>, %60, %cst_27 [2] : vector<1x16x16xf32> to vector<1x16xf32>
    %62 = vector.shape_cast %61 : vector<1x16xf32> to vector<1x16x1xf32>
    %cst_28 = arith.constant 0.000000e+00 : f32
    %63 = vector.broadcast %cst_28 : f32 to vector<1x16x1xf32>
    %64 = arith.subf %63, %57 : vector<1x16x1xf32>
    %65 = math.exp %64 : vector<1x16x1xf32>
    %cst_29 = arith.constant 8.000000e+00 : f32
    %66 = vector.broadcast %cst_29 : f32 to vector<1x16x1xf32>
    %67 = arith.mulf %66, %65 : vector<1x16x1xf32>
    %68 = arith.subf %62, %67 : vector<1x16x1xf32>
    %69 = arith.truncf %60 : vector<1x16x16xf32> to vector<1x16x16xbf16>
    %cst_30 = arith.constant dense<0.000000e+00> : vector<1x16x16xf32>
    %70 = tpu.matmul %69, %54, %cst_30 {dimension_numbers = #tpu.dot_dimension_numbers<[2], [1], [1], [2], [0, 0, 0, 1, 1, 2], [0], [0]>} : vector<1x16x16xbf16>, vector<1x16x16xbf16>, vector<1x16x16xf32> -> vector<1x16x16xf32>
    %71 = tpu.reciprocal %68 {approx = true} : vector<1x16x1xf32> -> vector<1x16x1xf32>
    %72 = vector.broadcast %71 : vector<1x16x1xf32> to vector<1x16x16xf32>
    %73 = arith.mulf %70, %72 : vector<1x16x16xf32>
    %c0_31 = arith.constant 0 : index
    %c0_32 = arith.constant 0 : index
    %74 = vector.load %arg8[%c0_31, %c0_32] : memref<16x32xf32, #tpu.memory_space<vmem>>, vector<16x32xf32>
    %75 = arith.truncf %73 : vector<1x16x16xf32> to vector<1x16x16xbf16>
    %76 = vector.shape_cast %75 : vector<1x16x16xbf16> to vector<16x16xbf16>
    %c16 = arith.constant 16 : index
    %c0_33 = arith.constant 0 : index
    %77 = vector.load %arg5[%c16, %c0_33] : memref<64x32xf32, #tpu.memory_space<vmem>>, vector<16x32xf32>
    %78 = arith.truncf %77 : vector<16x32xf32> to vector<16x32xbf16>
    %cst_34 = arith.constant dense<0.000000e+00> : vector<16x32xf32>
    %79 = tpu.matmul %76, %78, %cst_34 {dimension_numbers = #tpu.dot_dimension_numbers<[1], [0], [0], [1], [0, 0, 1, 1], [], []>} : vector<16x16xbf16>, vector<16x32xbf16>, vector<16x32xf32> -> vector<16x32xf32>
    %80 = arith.addf %74, %79 : vector<16x32xf32>
    %c0_35 = arith.constant 0 : index
    %c0_36 = arith.constant 0 : index
    %81 = vector.load %arg8[%c0_35, %c0_36] : memref<16x32xf32, #tpu.memory_space<vmem>>, vector<16x32xf32>
    tpu.vector_store %arg8[%c0_35, %c0_36], %80 {strides = array<i32>} : memref<16x32xf32, #tpu.memory_space<vmem>>, vector<16x32xf32>,
    %82 = vector.extract_strided_slice %5 {offsets = [0, 32], sizes = [16, 16], strides = [1, 1]} : vector<16x64xbf16> to vector<16x16xbf16>
    %83 = vector.shape_cast %82 : vector<16x16xbf16> to vector<1x16x16xbf16>
    %84 = vector.extract_strided_slice %9 {offsets = [0, 32], sizes = [16, 16], strides = [1, 1]} : vector<16x64xbf16> to vector<16x16xbf16>
    %85 = vector.shape_cast %84 : vector<16x16xbf16> to vector<1x16x16xbf16>
    %86 = vector.extract_strided_slice %13 {offsets = [0, 32], sizes = [16, 16], strides = [1, 1]} : vector<16x64xbf16> to vector<16x16xbf16>
    %87 = vector.shape_cast %86 : vector<16x16xbf16> to vector<1x16x16xbf16>
    %cst_37 = arith.constant dense<0.000000e+00> : vector<1x16x16xf32>
    %88 = tpu.matmul %83, %85, %cst_37 {dimension_numbers = #tpu.dot_dimension_numbers<[2], [2], [1], [1], [0, 0, 0, 1, 1, 1], [0], [0]>} : vector<1x16x16xbf16>, vector<1x16x16xbf16>, vector<1x16x16xf32> -> vector<1x16x16xf32>
    %cst_38 = arith.constant dense<0xFF800000> : vector<1x16xf32>
    %89 = vector.multi_reduction <maximumf>, %88, %cst_38 [2] : vector<1x16x16xf32> to vector<1x16xf32>
    %90 = vector.shape_cast %89 : vector<1x16xf32> to vector<1x16x1xf32>
    %91 = vector.broadcast %90 : vector<1x16x1xf32> to vector<1x16x16xf32>
    %92 = arith.subf %88, %91 : vector<1x16x16xf32>
    %93 = math.exp %92 : vector<1x16x16xf32>
    %cst_39 = arith.constant dense<0.000000e+00> : vector<1x16xf32>
    %94 = vector.multi_reduction <add>, %93, %cst_39 [2] : vector<1x16x16xf32> to vector<1x16xf32>
    %95 = vector.shape_cast %94 : vector<1x16xf32> to vector<1x16x1xf32>
    %cst_40 = arith.constant 0.000000e+00 : f32
    %96 = vector.broadcast %cst_40 : f32 to vector<1x16x1xf32>
    %97 = arith.subf %96, %90 : vector<1x16x1xf32>
    %98 = math.exp %97 : vector<1x16x1xf32>
    %cst_41 = arith.constant 8.000000e+00 : f32
    %99 = vector.broadcast %cst_41 : f32 to vector<1x16x1xf32>
    %100 = arith.mulf %99, %98 : vector<1x16x1xf32>
    %101 = arith.subf %95, %100 : vector<1x16x1xf32>
    %102 = arith.truncf %93 : vector<1x16x16xf32> to vector<1x16x16xbf16>
    %cst_42 = arith.constant dense<0.000000e+00> : vector<1x16x16xf32>
    %103 = tpu.matmul %102, %87, %cst_42 {dimension_numbers = #tpu.dot_dimension_numbers<[2], [1], [1], [2], [0, 0, 0, 1, 1, 2], [0], [0]>} : vector<1x16x16xbf16>, vector<1x16x16xbf16>, vector<1x16x16xf32> -> vector<1x16x16xf32>
    %104 = tpu.reciprocal %101 {approx = true} : vector<1x16x1xf32> -> vector<1x16x1xf32>
    %105 = vector.broadcast %104 : vector<1x16x1xf32> to vector<1x16x16xf32>
    %106 = arith.mulf %103, %105 : vector<1x16x16xf32>
    %c0_43 = arith.constant 0 : index
    %c0_44 = arith.constant 0 : index
    %107 = vector.load %arg8[%c0_43, %c0_44] : memref<16x32xf32, #tpu.memory_space<vmem>>, vector<16x32xf32>
    %108 = arith.truncf %106 : vector<1x16x16xf32> to vector<1x16x16xbf16>
    %109 = vector.shape_cast %108 : vector<1x16x16xbf16> to vector<16x16xbf16>
    %c32 = arith.constant 32 : index
    %c0_45 = arith.constant 0 : index
    %110 = vector.load %arg5[%c32, %c0_45] : memref<64x32xf32, #tpu.memory_space<vmem>>, vector<16x32xf32>
    %111 = arith.truncf %110 : vector<16x32xf32> to vector<16x32xbf16>
    %cst_46 = arith.constant dense<0.000000e+00> : vector<16x32xf32>
    %112 = tpu.matmul %109, %111, %cst_46 {dimension_numbers = #tpu.dot_dimension_numbers<[1], [0], [0], [1], [0, 0, 1, 1], [], []>} : vector<16x16xbf16>, vector<16x32xbf16>, vector<16x32xf32> -> vector<16x32xf32>
    %113 = arith.addf %107, %112 : vector<16x32xf32>
    %c0_47 = arith.constant 0 : index
    %c0_48 = arith.constant 0 : index
    %114 = vector.load %arg8[%c0_47, %c0_48] : memref<16x32xf32, #tpu.memory_space<vmem>>, vector<16x32xf32>
    tpu.vector_store %arg8[%c0_47, %c0_48], %113 {strides = array<i32>} : memref<16x32xf32, #tpu.memory_space<vmem>>, vector<16x32xf32>,
    %115 = vector.extract_strided_slice %5 {offsets = [0, 48], sizes = [16, 16], strides = [1, 1]} : vector<16x64xbf16> to vector<16x16xbf16>
    %116 = vector.shape_cast %115 : vector<16x16xbf16> to vector<1x16x16xbf16>
    %117 = vector.extract_strided_slice %9 {offsets = [0, 48], sizes = [16, 16], strides = [1, 1]} : vector<16x64xbf16> to vector<16x16xbf16>
    %118 = vector.shape_cast %117 : vector<16x16xbf16> to vector<1x16x16xbf16>
    %119 = vector.extract_strided_slice %13 {offsets = [0, 48], sizes = [16, 16], strides = [1, 1]} : vector<16x64xbf16> to vector<16x16xbf16>
    %120 = vector.shape_cast %119 : vector<16x16xbf16> to vector<1x16x16xbf16>
    %cst_49 = arith.constant dense<0.000000e+00> : vector<1x16x16xf32>
    %121 = tpu.matmul %116, %118, %cst_49 {dimension_numbers = #tpu.dot_dimension_numbers<[2], [2], [1], [1], [0, 0, 0, 1, 1, 1], [0], [0]>} : vector<1x16x16xbf16>, vector<1x16x16xbf16>, vector<1x16x16xf32> -> vector<1x16x16xf32>
    %cst_50 = arith.constant dense<0xFF800000> : vector<1x16xf32>
    %122 = vector.multi_reduction <maximumf>, %121, %cst_50 [2] : vector<1x16x16xf32> to vector<1x16xf32>
    %123 = vector.shape_cast %122 : vector<1x16xf32> to vector<1x16x1xf32>
    %124 = vector.broadcast %123 : vector<1x16x1xf32> to vector<1x16x16xf32>
    %125 = arith.subf %121, %124 : vector<1x16x16xf32>
    %126 = math.exp %125 : vector<1x16x16xf32>
    %cst_51 = arith.constant dense<0.000000e+00> : vector<1x16xf32>
    %127 = vector.multi_reduction <add>, %126, %cst_51 [2] : vector<1x16x16xf32> to vector<1x16xf32>
    %128 = vector.shape_cast %127 : vector<1x16xf32> to vector<1x16x1xf32>
    %cst_52 = arith.constant 0.000000e+00 : f32
    %129 = vector.broadcast %cst_52 : f32 to vector<1x16x1xf32>
    %130 = arith.subf %129, %123 : vector<1x16x1xf32>
    %131 = math.exp %130 : vector<1x16x1xf32>
    %cst_53 = arith.constant 8.000000e+00 : f32
    %132 = vector.broadcast %cst_53 : f32 to vector<1x16x1xf32>
    %133 = arith.mulf %132, %131 : vector<1x16x1xf32>
    %134 = arith.subf %128, %133 : vector<1x16x1xf32>
    %135 = arith.truncf %126 : vector<1x16x16xf32> to vector<1x16x16xbf16>
    %cst_54 = arith.constant dense<0.000000e+00> : vector<1x16x16xf32>
    %136 = tpu.matmul %135, %120, %cst_54 {dimension_numbers = #tpu.dot_dimension_numbers<[2], [1], [1], [2], [0, 0, 0, 1, 1, 2], [0], [0]>} : vector<1x16x16xbf16>, vector<1x16x16xbf16>, vector<1x16x16xf32> -> vector<1x16x16xf32>
    %137 = tpu.reciprocal %134 {approx = true} : vector<1x16x1xf32> -> vector<1x16x1xf32>
    %138 = vector.broadcast %137 : vector<1x16x1xf32> to vector<1x16x16xf32>
    %139 = arith.mulf %136, %138 : vector<1x16x16xf32>
    %c0_55 = arith.constant 0 : index
    %c0_56 = arith.constant 0 : index
    %140 = vector.load %arg8[%c0_55, %c0_56] : memref<16x32xf32, #tpu.memory_space<vmem>>, vector<16x32xf32>
    %141 = arith.truncf %139 : vector<1x16x16xf32> to vector<1x16x16xbf16>
    %142 = vector.shape_cast %141 : vector<1x16x16xbf16> to vector<16x16xbf16>
    %c48 = arith.constant 48 : index
    %c0_57 = arith.constant 0 : index
    %143 = vector.load %arg5[%c48, %c0_57] : memref<64x32xf32, #tpu.memory_space<vmem>>, vector<16x32xf32>
    %144 = arith.truncf %143 : vector<16x32xf32> to vector<16x32xbf16>
    %cst_58 = arith.constant dense<0.000000e+00> : vector<16x32xf32>
    %145 = tpu.matmul %142, %144, %cst_58 {dimension_numbers = #tpu.dot_dimension_numbers<[1], [0], [0], [1], [0, 0, 1, 1], [], []>} : vector<16x16xbf16>, vector<16x32xbf16>, vector<16x32xf32> -> vector<16x32xf32>
    %146 = arith.addf %140, %145 : vector<16x32xf32>
    %c0_59 = arith.constant 0 : index
    %c0_60 = arith.constant 0 : index
    %147 = vector.load %arg8[%c0_59, %c0_60] : memref<16x32xf32, #tpu.memory_space<vmem>>, vector<16x32xf32>
    tpu.vector_store %arg8[%c0_59, %c0_60], %146 {strides = array<i32>} : memref<16x32xf32, #tpu.memory_space<vmem>>, vector<16x32xf32>,
    %c0_61 = arith.constant 0 : index
    %c0_62 = arith.constant 0 : index
    %148 = vector.load %arg8[%c0_61, %c0_62] : memref<16x32xf32, #tpu.memory_space<vmem>>, vector<16x32xf32>
    %c0_63 = arith.constant 0 : index
    %c0_64 = arith.constant 0 : index
    %149 = vector.load %arg6[%c0_63, %c0_64] : memref<1x32xf32, #tpu.memory_space<vmem>>, vector<1x32xf32>
    %150 = vector.broadcast %149 : vector<1x32xf32> to vector<16x32xf32>
    %151 = arith.addf %148, %150 : vector<16x32xf32>
    %c0_65 = arith.constant 0 : index
    %c0_66 = arith.constant 0 : index
    %152 = vector.load %arg7[%c0_65, %c0_66] : memref<16x32xf32, #tpu.memory_space<vmem>>, vector<16x32xf32>
    tpu.vector_store %arg7[%c0_65, %c0_66], %151 {strides = array<i32>} : memref<16x32xf32, #tpu.memory_space<vmem>>, vector<16x32xf32>,
    return
  }
  func.func @transform_0(%arg0: i32) -> (i32, i32) {
    %c0_i32 = arith.constant 0 : i32
    %c0_i32_0 = arith.constant 0 : i32
    return %arg0, %c0_i32 : i32, i32
  }
  func.func @transform_1(%arg0: i32) -> (i32, i32) {
    %c0_i32 = arith.constant 0 : i32
    %c0_i32_0 = arith.constant 0 : i32
    %c0_i32_1 = arith.constant 0 : i32
    return %c0_i32, %c0_i32_0 : i32, i32
  }
  func.func @transform_2(%arg0: i32) -> (i32, i32) {
    %c0_i32 = arith.constant 0 : i32
    %c0_i32_0 = arith.constant 0 : i32
    %c0_i32_1 = arith.constant 0 : i32
    return %c0_i32, %c0_i32_0 : i32, i32
  }
  func.func @transform_3(%arg0: i32) -> (i32, i32) {
    %c0_i32 = arith.constant 0 : i32
    %c0_i32_0 = arith.constant 0 : i32
    %c0_i32_1 = arith.constant 0 : i32
    return %c0_i32, %c0_i32_0 : i32, i32
  }
  func.func @transform_4(%arg0: i32) -> (i32, i32) {
    %c0_i32 = arith.constant 0 : i32
    %c0_i32_0 = arith.constant 0 : i32
    %c0_i32_1 = arith.constant 0 : i32
    return %c0_i32, %c0_i32_0 : i32, i32
  }
  func.func @transform_5(%arg0: i32) -> (i32, i32) {
    %c0_i32 = arith.constant 0 : i32
    %c0_i32_0 = arith.constant 0 : i32
    %c0_i32_1 = arith.constant 0 : i32
    return %c0_i32, %c0_i32_0 : i32, i32
  }
  func.func @transform_6(%arg0: i32) -> (i32, i32) {
    %c0_i32 = arith.constant 0 : i32
    %c0_i32_0 = arith.constant 0 : i32
    return %arg0, %c0_i32 : i32, i32
  }
}

module attributes {stable_mosaic.version = 11 : i64} {
  func.func @_attention_kernel(%arg0: i32, %arg1: memref<16x32xf32, #tpu.memory_space<vmem>>, %arg2: memref<32x64xf32, #tpu.memory_space<vmem>>, %arg3: memref<32x64xf32, #tpu.memory_space<vmem>>, %arg4: memref<32x64xf32, #tpu.memory_space<vmem>>, %arg5: memref<64x32xf32, #tpu.memory_space<vmem>>, %arg6: memref<1x32xf32, #tpu.memory_space<vmem>>, %arg7: memref<16x32xf32, #tpu.memory_space<vmem>>, %arg8: memref<16x32xf32, #tpu.memory_space<vmem>>) attributes {dimension_semantics = [#tpu.dimension_semantics<parallel>], iteration_bounds = array<i64: 2>, scalar_prefetch = 0 : i64, scratch_operands = 1 : i64, tpu.core_type = #tpu.core_type<tc>, window_params = [{transform_indices = @transform_0, window_bounds = array<i64: 16, 32>}, {pipeline_mode = #tpu.pipeline_mode<synchronous>, transform_indices = @transform_1, window_bounds = array<i64: 32, 64>}, {pipeline_mode = #tpu.pipeline_mode<synchronous>, transform_indices = @transform_2, window_bounds = array<i64: 32, 64>}, {pipeline_mode = #tpu.pipeline_mode<synchronous>, transform_indices = @transform_3, window_bounds = array<i64: 32, 64>}, {pipeline_mode = #tpu.pipeline_mode<synchronous>, transform_indices = @transform_4, window_bounds = array<i64: 64, 32>}, {pipeline_mode = #tpu.pipeline_mode<synchronous>, transform_indices = @transform_5, window_bounds = array<i64: 1, 32>}, {transform_indices = @transform_6, window_bounds = array<i64: 16, 32>}]} {
    %c0 = arith.constant 0 : index
    %c0_0 = arith.constant 0 : index
    %0 = vector.load %arg1[%c0, %c0_0] : memref<16x32xf32, #tpu.memory_space<vmem>>, vector<16x32xf32>
    %1 = arith.truncf %0 : vector<16x32xf32> to vector<16x32xbf16>
    %c0_1 = arith.constant 0 : index
    %c0_2 = arith.constant 0 : index
    %2 = vector.load %arg2[%c0_1, %c0_2] : memref<32x64xf32, #tpu.memory_space<vmem>>, vector<32x64xf32>
    %3 = arith.truncf %2 : vector<32x64xf32> to vector<32x64xbf16>
    %cst = arith.constant dense<0.000000e+00> : vector<16x64xf32>
    %4 = tpu.matmul %1, %3, %cst {dimension_numbers = #tpu.dot_dimension_numbers<[1], [0], [0], [1], [0, 0, 1, 1], [], []>} : vector<16x32xbf16>, vector<32x64xbf16>, vector<16x64xf32> -> vector<16x64xf32>
    %5 = arith.truncf %4 : vector<16x64xf32> to vector<16x64xbf16>
    %c0_3 = arith.constant 0 : index
    %c0_4 = arith.constant 0 : index
    %6 = vector.load %arg3[%c0_3, %c0_4] : memref<32x64xf32, #tpu.memory_space<vmem>>, vector<32x64xf32>
    %7 = arith.truncf %6 : vector<32x64xf32> to vector<32x64xbf16>
    %cst_5 = arith.constant dense<0.000000e+00> : vector<16x64xf32>
    %8 = tpu.matmul %1, %7, %cst_5 {dimension_numbers = #tpu.dot_dimension_numbers<[1], [0], [0], [1], [0, 0, 1, 1], [], []>} : vector<16x32xbf16>, vector<32x64xbf16>, vector<16x64xf32> -> vector<16x64xf32>
    %9 = arith.truncf %8 : vector<16x64xf32> to vector<16x64xbf16>
    %c0_6 = arith.constant 0 : index
    %c0_7 = arith.constant 0 : index
    %10 = vector.load %arg4[%c0_6, %c0_7] : memref<32x64xf32, #tpu.memory_space<vmem>>, vector<32x64xf32>
    %11 = arith.truncf %10 : vector<32x64xf32> to vector<32x64xbf16>
    %cst_8 = arith.constant dense<0.000000e+00> : vector<16x64xf32>
    %12 = tpu.matmul %1, %11, %cst_8 {dimension_numbers = #tpu.dot_dimension_numbers<[1], [0], [0], [1], [0, 0, 1, 1], [], []>} : vector<16x32xbf16>, vector<32x64xbf16>, vector<16x64xf32> -> vector<16x64xf32>
    %13 = arith.truncf %12 : vector<16x64xf32> to vector<16x64xbf16>
    %cst_9 = arith.constant 0.000000e+00 : f32
    %14 = vector.broadcast %cst_9 : f32 to vector<16x32xf32>
    %c0_10 = arith.constant 0 : index
    %c0_11 = arith.constant 0 : index
    %15 = vector.load %arg8[%c0_10, %c0_11] : memref<16x32xf32, #tpu.memory_space<vmem>>, vector<16x32xf32>
    tpu.vector_store %arg8[%c0_10, %c0_11], %14 {strides = array<i32>} : memref<16x32xf32, #tpu.memory_space<vmem>>, vector<16x32xf32>,
    %16 = vector.extract_strided_slice %5 {offsets = [0, 0], sizes = [16, 16], strides = [1, 1]} : vector<16x64xbf16> to vector<16x16xbf16>
    %17 = vector.shape_cast %16 : vector<16x16xbf16> to vector<1x16x16xbf16>
    %18 = vector.extract_strided_slice %9 {offsets = [0, 0], sizes = [16, 16], strides = [1, 1]} : vector<16x64xbf16> to vector<16x16xbf16>
    %19 = vector.shape_cast %18 : vector<16x16xbf16> to vector<1x16x16xbf16>
    %20 = vector.extract_strided_slice %13 {offsets = [0, 0], sizes = [16, 16], strides = [1, 1]} : vector<16x64xbf16> to vector<16x16xbf16>
    %21 = vector.shape_cast %20 : vector<16x16xbf16> to vector<1x16x16xbf16>
    %cst_12 = arith.constant dense<0.000000e+00> : vector<1x16x16xf32>
    %22 = tpu.matmul %17, %19, %cst_12 {dimension_numbers = #tpu.dot_dimension_numbers<[2], [2], [1], [1], [0, 0, 0, 1, 1, 1], [0], [0]>} : vector<1x16x16xbf16>, vector<1x16x16xbf16>, vector<1x16x16xf32> -> vector<1x16x16xf32>
    %cst_13 = arith.constant dense<0xFF800000> : vector<1x16xf32>
    %23 = vector.multi_reduction <maximumf>, %22, %cst_13 [2] : vector<1x16x16xf32> to vector<1x16xf32>
    %24 = vector.shape_cast %23 : vector<1x16xf32> to vector<1x16x1xf32>
    %25 = vector.broadcast %24 : vector<1x16x1xf32> to vector<1x16x16xf32>
    %26 = arith.subf %22, %25 : vector<1x16x16xf32>
    %27 = math.exp %26 : vector<1x16x16xf32>
    %cst_14 = arith.constant dense<0.000000e+00> : vector<1x16xf32>
    %28 = vector.multi_reduction <add>, %27, %cst_14 [2] : vector<1x16x16xf32> to vector<1x16xf32>
    %29 = vector.shape_cast %28 : vector<1x16xf32> to vector<1x16x1xf32>
    %cst_15 = arith.constant 0.000000e+00 : f32
    %30 = vector.broadcast %cst_15 : f32 to vector<1x16x1xf32>
    %31 = arith.subf %30, %24 : vector<1x16x1xf32>
    %32 = math.exp %31 : vector<1x16x1xf32>
    %cst_16 = arith.constant 8.000000e+00 : f32
    %33 = vector.broadcast %cst_16 : f32 to vector<1x16x1xf32>
    %34 = arith.mulf %33, %32 : vector<1x16x1xf32>
    %35 = arith.subf %29, %34 : vector<1x16x1xf32>
    %36 = arith.truncf %27 : vector<1x16x16xf32> to vector<1x16x16xbf16>
    %cst_17 = arith.constant dense<0.000000e+00> : vector<1x16x16xf32>
    %37 = tpu.matmul %36, %21, %cst_17 {dimension_numbers = #tpu.dot_dimension_numbers<[2], [1], [1], [2], [0, 0, 0, 1, 1, 2], [0], [0]>} : vector<1x16x16xbf16>, vector<1x16x16xbf16>, vector<1x16x16xf32> -> vector<1x16x16xf32>
    %38 = tpu.reciprocal %35 {approx = true} : vector<1x16x1xf32> -> vector<1x16x1xf32>
    %39 = vector.broadcast %38 : vector<1x16x1xf32> to vector<1x16x16xf32>
    %40 = arith.mulf %37, %39 : vector<1x16x16xf32>
    %c0_18 = arith.constant 0 : index
    %c0_19 = arith.constant 0 : index
    %41 = vector.load %arg8[%c0_18, %c0_19] : memref<16x32xf32, #tpu.memory_space<vmem>>, vector<16x32xf32>
    %42 = arith.truncf %40 : vector<1x16x16xf32> to vector<1x16x16xbf16>
    %43 = vector.shape_cast %42 : vector<1x16x16xbf16> to vector<16x16xbf16>
    %c0_20 = arith.constant 0 : index
    %c0_21 = arith.constant 0 : index
    %44 = vector.load %arg5[%c0_20, %c0_21] : memref<64x32xf32, #tpu.memory_space<vmem>>, vector<16x32xf32>
    %45 = arith.truncf %44 : vector<16x32xf32> to vector<16x32xbf16>
    %cst_22 = arith.constant dense<0.000000e+00> : vector<16x32xf32>
    %46 = tpu.matmul %43, %45, %cst_22 {dimension_numbers = #tpu.dot_dimension_numbers<[1], [0], [0], [1], [0, 0, 1, 1], [], []>} : vector<16x16xbf16>, vector<16x32xbf16>, vector<16x32xf32> -> vector<16x32xf32>
    %47 = arith.addf %41, %46 : vector<16x32xf32>
    %c0_23 = arith.constant 0 : index
    %c0_24 = arith.constant 0 : index
    %48 = vector.load %arg8[%c0_23, %c0_24] : memref<16x32xf32, #tpu.memory_space<vmem>>, vector<16x32xf32>
    tpu.vector_store %arg8[%c0_23, %c0_24], %47 {strides = array<i32>} : memref<16x32xf32, #tpu.memory_space<vmem>>, vector<16x32xf32>,
    %49 = vector.extract_strided_slice %5 {offsets = [0, 16], sizes = [16, 16], strides = [1, 1]} : vector<16x64xbf16> to vector<16x16xbf16>
    %50 = vector.shape_cast %49 : vector<16x16xbf16> to vector<1x16x16xbf16>
    %51 = vector.extract_strided_slice %9 {offsets = [0, 16], sizes = [16, 16], strides = [1, 1]} : vector<16x64xbf16> to vector<16x16xbf16>
    %52 = vector.shape_cast %51 : vector<16x16xbf16> to vector<1x16x16xbf16>
    %53 = vector.extract_strided_slice %13 {offsets = [0, 16], sizes = [16, 16], strides = [1, 1]} : vector<16x64xbf16> to vector<16x16xbf16>
    %54 = vector.shape_cast %53 : vector<16x16xbf16> to vector<1x16x16xbf16>
    %cst_25 = arith.constant dense<0.000000e+00> : vector<1x16x16xf32>
    %55 = tpu.matmul %50, %52, %cst_25 {dimension_numbers = #tpu.dot_dimension_numbers<[2], [2], [1], [1], [0, 0, 0, 1, 1, 1], [0], [0]>} : vector<1x16x16xbf16>, vector<1x16x16xbf16>, vector<1x16x16xf32> -> vector<1x16x16xf32>
    %cst_26 = arith.constant dense<0xFF800000> : vector<1x16xf32>
    %56 = vector.multi_reduction <maximumf>, %55, %cst_26 [2] : vector<1x16x16xf32> to vector<1x16xf32>
    %57 = vector.shape_cast %56 : vector<1x16xf32> to vector<1x16x1xf32>
    %58 = vector.broadcast %57 : vector<1x16x1xf32> to vector<1x16x16xf32>
    %59 = arith.subf %55, %58 : vector<1x16x16xf32>
    %60 = math.exp %59 : vector<1x16x16xf32>
    %cst_27 = arith.constant dense<0.000000e+00> : vector<1x16xf32>
    %61 = vector.multi_reduction <add>, %60, %cst_27 [2] : vector<1x16x16xf32> to vector<1x16xf32>
    %62 = vector.shape_cast %61 : vector<1x16xf32> to vector<1x16x1xf32>
    %cst_28 = arith.constant 0.000000e+00 : f32
    %63 = vector.broadcast %cst_28 : f32 to vector<1x16x1xf32>
    %64 = arith.subf %63, %57 : vector<1x16x1xf32>
    %65 = math.exp %64 : vector<1x16x1xf32>
    %cst_29 = arith.constant 8.000000e+00 : f32
    %66 = vector.broadcast %cst_29 : f32 to vector<1x16x1xf32>
    %67 = arith.mulf %66, %65 : vector<1x16x1xf32>
    %68 = arith.subf %62, %67 : vector<1x16x1xf32>
    %69 = arith.truncf %60 : vector<1x16x16xf32> to vector<1x16x16xbf16>
    %cst_30 = arith.constant dense<0.000000e+00> : vector<1x16x16xf32>
    %70 = tpu.matmul %69, %54, %cst_30 {dimension_numbers = #tpu.dot_dimension_numbers<[2], [1], [1], [2], [0, 0, 0, 1, 1, 2], [0], [0]>} : vector<1x16x16xbf16>, vector<1x16x16xbf16>, vector<1x16x16xf32> -> vector<1x16x16xf32>
    %71 = tpu.reciprocal %68 {approx = true} : vector<1x16x1xf32> -> vector<1x16x1xf32>
    %72 = vector.broadcast %71 : vector<1x16x1xf32> to vector<1x16x16xf32>
    %73 = arith.mulf %70, %72 : vector<1x16x16xf32>
    %c0_31 = arith.constant 0 : index
    %c0_32 = arith.constant 0 : index
    %74 = vector.load %arg8[%c0_31, %c0_32] : memref<16x32xf32, #tpu.memory_space<vmem>>, vector<16x32xf32>
    %75 = arith.truncf %73 : vector<1x16x16xf32> to vector<1x16x16xbf16>
    %76 = vector.shape_cast %75 : vector<1x16x16xbf16> to vector<16x16xbf16>
    %c16 = arith.constant 16 : index
    %c0_33 = arith.constant 0 : index
    %77 = vector.load %arg5[%c16, %c0_33] : memref<64x32xf32, #tpu.memory_space<vmem>>, vector<16x32xf32>
    %78 = arith.truncf %77 : vector<16x32xf32> to vector<16x32xbf16>
    %cst_34 = arith.constant dense<0.000000e+00> : vector<16x32xf32>
    %79 = tpu.matmul %76, %78, %cst_34 {dimension_numbers = #tpu.dot_dimension_numbers<[1], [0], [0], [1], [0, 0, 1, 1], [], []>} : vector<16x16xbf16>, vector<16x32xbf16>, vector<16x32xf32> -> vector<16x32xf32>
    %80 = arith.addf %74, %79 : vector<16x32xf32>
    %c0_35 = arith.constant 0 : index
    %c0_36 = arith.constant 0 : index
    %81 = vector.load %arg8[%c0_35, %c0_36] : memref<16x32xf32, #tpu.memory_space<vmem>>, vector<16x32xf32>
    tpu.vector_store %arg8[%c0_35, %c0_36], %80 {strides = array<i32>} : memref<16x32xf32, #tpu.memory_space<vmem>>, vector<16x32xf32>,
    %82 = vector.extract_strided_slice %5 {offsets = [0, 32], sizes = [16, 16], strides = [1, 1]} : vector<16x64xbf16> to vector<16x16xbf16>
    %83 = vector.shape_cast %82 : vector<16x16xbf16> to vector<1x16x16xbf16>
    %84 = vector.extract_strided_slice %9 {offsets = [0, 32], sizes = [16, 16], strides = [1, 1]} : vector<16x64xbf16> to vector<16x16xbf16>
    %85 = vector.shape_cast %84 : vector<16x16xbf16> to vector<1x16x16xbf16>
    %86 = vector.extract_strided_slice %13 {offsets = [0, 32], sizes = [16, 16], strides = [1, 1]} : vector<16x64xbf16> to vector<16x16xbf16>
    %87 = vector.shape_cast %86 : vector<16x16xbf16> to vector<1x16x16xbf16>
    %cst_37 = arith.constant dense<0.000000e+00> : vector<1x16x16xf32>
    %88 = tpu.matmul %83, %85, %cst_37 {dimension_numbers = #tpu.dot_dimension_numbers<[2], [2], [1], [1], [0, 0, 0, 1, 1, 1], [0], [0]>} : vector<1x16x16xbf16>, vector<1x16x16xbf16>, vector<1x16x16xf32> -> vector<1x16x16xf32>
    %cst_38 = arith.constant dense<0xFF800000> : vector<1x16xf32>
    %89 = vector.multi_reduction <maximumf>, %88, %cst_38 [2] : vector<1x16x16xf32> to vector<1x16xf32>
    %90 = vector.shape_cast %89 : vector<1x16xf32> to vector<1x16x1xf32>
    %91 = vector.broadcast %90 : vector<1x16x1xf32> to vector<1x16x16xf32>
    %92 = arith.subf %88, %91 : vector<1x16x16xf32>
    %93 = math.exp %92 : vector<1x16x16xf32>
    %cst_39 = arith.constant dense<0.000000e+00> : vector<1x16xf32>
    %94 = vector.multi_reduction <add>, %93, %cst_39 [2] : vector<1x16x16xf32> to vector<1x16xf32>
    %95 = vector.shape_cast %94 : vector<1x16xf32> to vector<1x16x1xf32>
    %cst_40 = arith.constant 0.000000e+00 : f32
    %96 = vector.broadcast %cst_40 : f32 to vector<1x16x1xf32>
    %97 = arith.subf %96, %90 : vector<1x16x1xf32>
    %98 = math.exp %97 : vector<1x16x1xf32>
    %cst_41 = arith.constant 8.000000e+00 : f32
    %99 = vector.broadcast %cst_41 : f32 to vector<1x16x1xf32>
    %100 = arith.mulf %99, %98 : vector<1x16x1xf32>
    %101 = arith.subf %95, %100 : vector<1x16x1xf32>
    %102 = arith.truncf %93 : vector<1x16x16xf32> to vector<1x16x16xbf16>
    %cst_42 = arith.constant dense<0.000000e+00> : vector<1x16x16xf32>
    %103 = tpu.matmul %102, %87, %cst_42 {dimension_numbers = #tpu.dot_dimension_numbers<[2], [1], [1], [2], [0, 0, 0, 1, 1, 2], [0], [0]>} : vector<1x16x16xbf16>, vector<1x16x16xbf16>, vector<1x16x16xf32> -> vector<1x16x16xf32>
    %104 = tpu.reciprocal %101 {approx = true} : vector<1x16x1xf32> -> vector<1x16x1xf32>
    %105 = vector.broadcast %104 : vector<1x16x1xf32> to vector<1x16x16xf32>
    %106 = arith.mulf %103, %105 : vector<1x16x16xf32>
    %c0_43 = arith.constant 0 : index
    %c0_44 = arith.constant 0 : index
    %107 = vector.load %arg8[%c0_43, %c0_44] : memref<16x32xf32, #tpu.memory_space<vmem>>, vector<16x32xf32>
    %108 = arith.truncf %106 : vector<1x16x16xf32> to vector<1x16x16xbf16>
    %109 = vector.shape_cast %108 : vector<1x16x16xbf16> to vector<16x16xbf16>
    %c32 = arith.constant 32 : index
    %c0_45 = arith.constant 0 : index
    %110 = vector.load %arg5[%c32, %c0_45] : memref<64x32xf32, #tpu.memory_space<vmem>>, vector<16x32xf32>
    %111 = arith.truncf %110 : vector<16x32xf32> to vector<16x32xbf16>
    %cst_46 = arith.constant dense<0.000000e+00> : vector<16x32xf32>
    %112 = tpu.matmul %109, %111, %cst_46 {dimension_numbers = #tpu.dot_dimension_numbers<[1], [0], [0], [1], [0, 0, 1, 1], [], []>} : vector<16x16xbf16>, vector<16x32xbf16>, vector<16x32xf32> -> vector<16x32xf32>
    %113 = arith.addf %107, %112 : vector<16x32xf32>
    %c0_47 = arith.constant 0 : index
    %c0_48 = arith.constant 0 : index
    %114 = vector.load %arg8[%c0_47, %c0_48] : memref<16x32xf32, #tpu.memory_space<vmem>>, vector<16x32xf32>
    tpu.vector_store %arg8[%c0_47, %c0_48], %113 {strides = array<i32>} : memref<16x32xf32, #tpu.memory_space<vmem>>, vector<16x32xf32>,
    %115 = vector.extract_strided_slice %5 {offsets = [0, 48], sizes = [16, 16], strides = [1, 1]} : vector<16x64xbf16> to vector<16x16xbf16>
    %116 = vector.shape_cast %115 : vector<16x16xbf16> to vector<1x16x16xbf16>
    %117 = vector.extract_strided_slice %9 {offsets = [0, 48], sizes = [16, 16], strides = [1, 1]} : vector<16x64xbf16> to vector<16x16xbf16>
    %118 = vector.shape_cast %117 : vector<16x16xbf16> to vector<1x16x16xbf16>
    %119 = vector.extract_strided_slice %13 {offsets = [0, 48], sizes = [16, 16], strides = [1, 1]} : vector<16x64xbf16> to vector<16x16xbf16>
    %120 = vector.shape_cast %119 : vector<16x16xbf16> to vector<1x16x16xbf16>
    %cst_49 = arith.constant dense<0.000000e+00> : vector<1x16x16xf32>
    %121 = tpu.matmul %116, %118, %cst_49 {dimension_numbers = #tpu.dot_dimension_numbers<[2], [2], [1], [1], [0, 0, 0, 1, 1, 1], [0], [0]>} : vector<1x16x16xbf16>, vector<1x16x16xbf16>, vector<1x16x16xf32> -> vector<1x16x16xf32>
    %cst_50 = arith.constant dense<0xFF800000> : vector<1x16xf32>
    %122 = vector.multi_reduction <maximumf>, %121, %cst_50 [2] : vector<1x16x16xf32> to vector<1x16xf32>
    %123 = vector.shape_cast %122 : vector<1x16xf32> to vector<1x16x1xf32>
    %124 = vector.broadcast %123 : vector<1x16x1xf32> to vector<1x16x16xf32>
    %125 = arith.subf %121, %124 : vector<1x16x16xf32>
    %126 = math.exp %125 : vector<1x16x16xf32>
    %cst_51 = arith.constant dense<0.000000e+00> : vector<1x16xf32>
    %127 = vector.multi_reduction <add>, %126, %cst_51 [2] : vector<1x16x16xf32> to vector<1x16xf32>
    %128 = vector.shape_cast %127 : vector<1x16xf32> to vector<1x16x1xf32>
    %cst_52 = arith.constant 0.000000e+00 : f32
    %129 = vector.broadcast %cst_52 : f32 to vector<1x16x1xf32>
    %130 = arith.subf %129, %123 : vector<1x16x1xf32>
    %131 = math.exp %130 : vector<1x16x1xf32>
    %cst_53 = arith.constant 8.000000e+00 : f32
    %132 = vector.broadcast %cst_53 : f32 to vector<1x16x1xf32>
    %133 = arith.mulf %132, %131 : vector<1x16x1xf32>
    %134 = arith.subf %128, %133 : vector<1x16x1xf32>
    %135 = arith.truncf %126 : vector<1x16x16xf32> to vector<1x16x16xbf16>
    %cst_54 = arith.constant dense<0.000000e+00> : vector<1x16x16xf32>
    %136 = tpu.matmul %135, %120, %cst_54 {dimension_numbers = #tpu.dot_dimension_numbers<[2], [1], [1], [2], [0, 0, 0, 1, 1, 2], [0], [0]>} : vector<1x16x16xbf16>, vector<1x16x16xbf16>, vector<1x16x16xf32> -> vector<1x16x16xf32>
    %137 = tpu.reciprocal %134 {approx = true} : vector<1x16x1xf32> -> vector<1x16x1xf32>
    %138 = vector.broadcast %137 : vector<1x16x1xf32> to vector<1x16x16xf32>
    %139 = arith.mulf %136, %138 : vector<1x16x16xf32>
    %c0_55 = arith.constant 0 : index
    %c0_56 = arith.constant 0 : index
    %140 = vector.load %arg8[%c0_55, %c0_56] : memref<16x32xf32, #tpu.memory_space<vmem>>, vector<16x32xf32>
    %141 = arith.truncf %139 : vector<1x16x16xf32> to vector<1x16x16xbf16>
    %142 = vector.shape_cast %141 : vector<1x16x16xbf16> to vector<16x16xbf16>
    %c48 = arith.constant 48 : index
    %c0_57 = arith.constant 0 : index
    %143 = vector.load %arg5[%c48, %c0_57] : memref<64x32xf32, #tpu.memory_space<vmem>>, vector<16x32xf32>
    %144 = arith.truncf %143 : vector<16x32xf32> to vector<16x32xbf16>
    %cst_58 = arith.constant dense<0.000000e+00> : vector<16x32xf32>
    %145 = tpu.matmul %142, %144, %cst_58 {dimension_numbers = #tpu.dot_dimension_numbers<[1], [0], [0], [1], [0, 0, 1, 1], [], []>} : vector<16x16xbf16>, vector<16x32xbf16>, vector<16x32xf32> -> vector<16x32xf32>
    %146 = arith.addf %140, %145 : vector<16x32xf32>
    %c0_59 = arith.constant 0 : index
    %c0_60 = arith.constant 0 : index
    %147 = vector.load %arg8[%c0_59, %c0_60] : memref<16x32xf32, #tpu.memory_space<vmem>>, vector<16x32xf32>
    tpu.vector_store %arg8[%c0_59, %c0_60], %146 {strides = array<i32>} : memref<16x32xf32, #tpu.memory_space<vmem>>, vector<16x32xf32>,
    %c0_61 = arith.constant 0 : index
    %c0_62 = arith.constant 0 : index
    %148 = vector.load %arg8[%c0_61, %c0_62] : memref<16x32xf32, #tpu.memory_space<vmem>>, vector<16x32xf32>
    %c0_63 = arith.constant 0 : index
    %c0_64 = arith.constant 0 : index
    %149 = vector.load %arg6[%c0_63, %c0_64] : memref<1x32xf32, #tpu.memory_space<vmem>>, vector<1x32xf32>
    %150 = vector.broadcast %149 : vector<1x32xf32> to vector<16x32xf32>
    %151 = arith.addf %148, %150 : vector<16x32xf32>
    %c0_65 = arith.constant 0 : index
    %c0_66 = arith.constant 0 : index
    %152 = vector.load %arg7[%c0_65, %c0_66] : memref<16x32xf32, #tpu.memory_space<vmem>>, vector<16x32xf32>
    tpu.vector_store %arg7[%c0_65, %c0_66], %151 {strides = array<i32>} : memref<16x32xf32, #tpu.memory_space<vmem>>, vector<16x32xf32>,
    return
  }
  func.func @transform_0(%arg0: i32) -> (i32, i32) {
    %c0_i32 = arith.constant 0 : i32
    %c0_i32_0 = arith.constant 0 : i32
    return %arg0, %c0_i32 : i32, i32
  }
  func.func @transform_1(%arg0: i32) -> (i32, i32) {
    %c0_i32 = arith.constant 0 : i32
    %c0_i32_0 = arith.constant 0 : i32
    %c0_i32_1 = arith.constant 0 : i32
    return %c0_i32, %c0_i32_0 : i32, i32
  }
  func.func @transform_2(%arg0: i32) -> (i32, i32) {
    %c0_i32 = arith.constant 0 : i32
    %c0_i32_0 = arith.constant 0 : i32
    %c0_i32_1 = arith.constant 0 : i32
    return %c0_i32, %c0_i32_0 : i32, i32
  }
  func.func @transform_3(%arg0: i32) -> (i32, i32) {
    %c0_i32 = arith.constant 0 : i32
    %c0_i32_0 = arith.constant 0 : i32
    %c0_i32_1 = arith.constant 0 : i32
    return %c0_i32, %c0_i32_0 : i32, i32
  }
  func.func @transform_4(%arg0: i32) -> (i32, i32) {
    %c0_i32 = arith.constant 0 : i32
    %c0_i32_0 = arith.constant 0 : i32
    %c0_i32_1 = arith.constant 0 : i32
    return %c0_i32, %c0_i32_0 : i32, i32
  }
  func.func @transform_5(%arg0: i32) -> (i32, i32) {
    %c0_i32 = arith.constant 0 : i32
    %c0_i32_0 = arith.constant 0 : i32
    %c0_i32_1 = arith.constant 0 : i32
    return %c0_i32, %c0_i32_0 : i32, i32
  }
  func.func @transform_6(%arg0: i32) -> (i32, i32) {
    %c0_i32 = arith.constant 0 : i32
    %c0_i32_0 = arith.constant 0 : i32
    return %arg0, %c0_i32 : i32, i32
  }
}

</mosaic_0001>

<bundles_post_ra>
// kernel: tpu_custom_call.1
= control target key start
LH: loop header
LB: loop body
LE: loop exit
PB: predicated region body
PF: predicated region fallthrough
CT: control target
= control target key end

     0   :  { %11 = vsyncpa [#allocation4], 0  ;;  %s1981_s0 = inlined_call_operand.vmem [shape: f32[32,32], index: 0, kind: input, shape index: {}]   ;;  %s1982_s1 = inlined_call_operand.vmem [shape: f32[32,64], index: 1, kind: input, shape index: {}]   ;;  %s1983_s2 = inlined_call_operand.vmem [shape: f32[32,64], index: 2, kind: input, shape index: {}]   ;;  %s1984_s3 = inlined_call_operand.hbm [shape: f32[32,64], index: 3, kind: input, shape index: {}]   ;;  %s1985_s4 = inlined_call_operand.vmem [shape: f32[64,32], index: 4, kind: input, shape index: {}]   ;;  %s1986_s5 = inlined_call_operand.vmem [shape: f32[1,32], index: 5, kind: input, shape index: {}]   ;;  %s1987_s6 = inlined_call_operand.hbm [shape: f32[32,32], index: 6, kind: output, shape index: {}]  }
   0x1   :  { %12 = vsyncpa [#allocation5], 0 }
   0x2   :  { %14 = vsyncpa [#allocation5 + $0x1], 0  ;;  %s1669_s21 = smov 0   ;;  %s1671_s22 = smov 0  }
   0x3   :  { %s1673_s23 = smov 0   ;;  %s1675_s24 = smov 0  }
   0x4 LB: > { %s1690_s25 = sadd.s32 4294967295, %s1621_s24   ;;  %s1260_s26 = sadd.s32 4294967294, %s1621_s24   ;;  %s1621_s24 = sphi %s1675_s24, %s2003_s24   ;;  %s1617_s23 = sphi %s1673_s23, %s2002_s23   ;;  %s1613_s22 = sphi %s1671_s22, %s2001_s22   ;;  %s1609_s21 = sphi %s1669_s21, %s2000_s21  }
   0x5   : > { %s1694_s27 = sadd.s32 1, %s1621_s24   ;;  %s158_s28 = sadd.s32 1, %s1617_s23 }
   0x6   : > { %s155_s29 = ssub.s32 %s1621_s24, %s1694_s27  ;;  %p168_p0 = scmp.ne.s32.totalorder %s1617_s23, %s1613_s22 }
   0x7   : > { %p156_p1 = scmp.eq.s32.totalorder %s155_s29, 0  ;;  %p169_p2 = scmp.eq.s32.totalorder %s1690_s25, 1 }
   0x8   : > { %p174_p3 = scmp.ne.s32.totalorder %s1613_s22, %s1609_s21  ;;  %p175_p4 = scmp.eq.s32.totalorder %s1260_s26, 1 }
   0x9   : > { %s1705_s30 = scalar_select %p156_p1, %s1617_s23, %s158_s28  }
   0xa   : > { %p1707_p5 = por %p169_p2, %p168_p0  ;;  %p1711_p6 = por %p175_p4, %p174_p3 }
   0xb   : > { %p1261_p7 = scmp.ge.s32.totalorder %s1621_s24, 1  ;;  %p182_p8 = scmp.lt.s32.totalorder %s1621_s24, 3 }
   0xc   : > { %s1991_s7 = scalar_select %p1707_p5, 1, 0 }
   0xd   : > { %s1992_s8 = scalar_select %p1711_p6, 1, 0 }
   0xe   : > { %p1988_p9 = scmp.eq.s32.totalorder %s1690_s25, 0  ;;  %p1718_p10 = pnand %p1261_p7, %p182_p8 }
   0xf   : > { %s1623_s10 = smov [#allocation3]   ;;  %s1527_s15 = scalar_lea.hbm %s1984_s3, 512 }
  0x10   : > { %s1993_s9 = scalar_select %p1718_p10, 1, 0 }
  0x11   : > { %s200_s11 = sshll.u32 %s1623_s10, 4  ;;  %p1426_p11 = pneg %p1718_p10  ;;  %s201_s11 = int_to_ptr.vmem [resolvable:$true] %s200_s11 }
  0x12   : > { %p1528_p13 = scmp.ne.s32.totalorder %s1984_s3, %s1527_s15  ;;  %p1534_p3 = scmp.lt.u32.totalorder %s1527_s15, %s1984_s3 }
  0x13   : > { %p1726_p12 = pnand %p1988_p9, %p1426_p11 }
  0x15   : > { %p1529_p0 = pneg %p1726_p12 }
  0x17   : > { %p1530_p1 = pnand %p1529_p0, %p1528_p13 }
  0x19   : > { %p1531_p2 = pneg %p1530_p1 }
  0x1b   : > { %p1536_p4 = pnand %p1534_p3, %p1531_p2 }
  0x1d   : > { %1539 = shalt.err (!%p1536_p4)
}
  0x1e   : > { %s1540_s20 = scalar_lea.vmem %s201_s11, 512  ;;  %p1548_p9 = scmp.lt.s32.totalorder %s201_s11, %s201_s11 }
  0x1f   : > { %p1541_p7 = scmp.ne.s32.totalorder %s201_s11, %s1540_s20  ;;  %p1549_p6 = scmp.lt.s32.totalorder %s1540_s20, %s1540_s20 }
  0x21   : > { %p1543_p8 = pnand %p1541_p7, %p1529_p0  ;;  %p1550_p5 = por %p1549_p6, %p1548_p9 }
  0x23   : > { %p1544_p11 = pneg %p1543_p8 }
  0x25   : > { %p1551_p10 = pnand %p1550_p5, %p1544_p11 }
  0x27   : > { %1554 = shalt.err (!%p1551_p10)
}
  0x28   : > { %s1624_s26 = smov 128   ;;  %s1625_s28 = smov 8  }
  0x29   : > { %1429 = dma.hbm_to_vmem [thread:$0]  (!%p1726_p12), %s1984_s3, 512, %s201_s11, [#allocation4], %s1624_s26, %s1624_s26, %s1625_s28  }
  0x2a   : > { %p1995_p13 = scmp.ne.s32.totalorder %s1993_s9, 0 }
  0x2b   : > { %p1996_p1 = scmp.eq.s32.totalorder (!%p1995_p13), %s1690_s25, 0 }
  0x2c   : > { %231 = sbr.rel (%p1995_p13) target bundleno = 2273 (0x8e1), region = 44 }
  0x33   : > { %1600 = dma.done.wait (%p1996_p1), [#allocation4], 512   ;;  %p1997_p0 = pmov %p1996_p1 }
  0x34   : > { %s1267_s13 = sshll.u32 %s1690_s25, 1  ;;  %vm278_vm0 = vcmask 261120   ;;  %v1626_v0 = vmov 0.0   ;;  %vm1627_vm1 = vmmov 0   ;;  %v324_v1 = vld [vmem:[%s1983_s2] sm:$0xff]  ;;  %v325_v2 = vld [vmem:[%s1983_s2 + $0x8] sm:$0xff] }
  0x35   : > { %1602 = vsyncadd (%p1997_p0), [#allocation4], 4294966784  ;;  %1332 = vmatprep.subr.bf16.mxu1 %v1626_v0  ;;  %1324 = vmatprep.subr.bf16.mxu0 %v1626_v0  ;;  %p262_p5 = scmp.lt.s32.totalorder %s1267_s13, 3  ;;  %420 = vst.msk [vmem:[#allocation2] sm:$0xff] %vm278_vm0, %v1626_v0  ;;  %v326_v3 = vld [vmem:[%s1983_s2 + $0x10] sm:$0xff]  ;;  %v328_v4 = vpack.c.bf16 %v325_v2, %v324_v1  ;;  %v327_v5 = vld [vmem:[%s1983_s2 + $0x18] sm:$0xff] }
  0x36   : > { %421 = vst.msk [vmem:[#allocation2 + $0x8] sm:$0xff] %vm278_vm0, %v1626_v0  ;;  %1336 = vmatprep.mubr.msk.bf16.mxu1 %vm1627_vm1, %v1626_v0  ;;  %1328 = vmatprep.mubr.msk.bf16.mxu0 %vm1627_vm1, %v1626_v0  ;;  %v272_v6 = vld [vmem:[%s1982_s1] sm:$0xff]  ;;  %v273_v7 = vld [vmem:[%s1982_s1 + $0x8] sm:$0xff]  ;;  %v274_v9 = vld [vmem:[%s1982_s1 + $0x10] sm:$0xff]  ;;  %v329_v10 = vpack.c.bf16 %v327_v5, %v326_v3  ;;  %vm422_vm2 = vcmask 130048   ;;  %s1628_s16 = smov 112  }
  0x37   : > { %s2005_s13 = smov (!%p262_p5, %s1267_s13), 3  ;;  %v276_v8 = vpack.c.bf16 %v273_v7, %v272_v6  ;;  %1333 = vmatpush3.bf16.msra.mxu1 %v328_v4  ;;  %v275_v13 = vld [vmem:[%s1982_s1 + $0x18] sm:$0xff]  ;;  %v372_v16 = vld [vmem:[#allocation3] sm:$0xff]  ;;  %v374_v18 = vld [vmem:[#allocation3 + $0x10] sm:$0xff]  ;;  %s1629_s17 = smov 96  }
  0x38   : > { %s1268_s9 = sshll.u32 %s2005_s13, 3  ;;  %1334 = vmatprep.subr.bf16.mxu1 %v1626_v0  ;;  %v277_v14 = vpack.c.bf16 %v275_v13, %v274_v9  ;;  %v373_v17 = vld [vmem:[#allocation3 + $0x8] sm:$0xff]  ;;  %v375_v20 = vld [vmem:[#allocation3 + $0x18] sm:$0xff]  ;;  %v550_v58 = vld [vmem:[%s1985_s4] sm:$0xff]  ;;  %s1630_s28 = smov 80  }
  0x39   : > { %s265_s20 = scalar_lea.vmem %s1981_s0, %s1268_s9  ;;  %1325 = vmatpush3.bf16.msra.mxu0 %v276_v8  ;;  %v376_v19 = vpack.c.bf16 %v373_v17, %v372_v16  ;;  %v377_v21 = vpack.c.bf16 %v375_v20, %v374_v18  ;;  %v551_v59 = vld [vmem:[%s1985_s4 + $0x8] sm:$0xff]  ;;  %s1290_s10 = sshll.u32 %s1690_s25, 8 }
  0x3a   : > { %v269_v11 = vld [vmem:[%s265_s20] sm:$0xff]  ;;  %v270_v12 = vld [vmem:[%s265_s20 + $0x8] sm:$0xff]  ;;  %1326 = vmatprep.subr.bf16.mxu0 %v1626_v0  ;;  %v552_v60 = vpack.c.bf16 %v551_v59, %v550_v58  ;;  %s258_s20 = sand.u32 1, %s1613_s22   ;;  %s1934_s9 = scalar_lea.hbm %s1987_s6, %s1290_s10 }
  0x3b   : > { %v271_v15 = vpack.c.bf16 %v270_v12, %v269_v11  ;;  %1335 = vmatpush3.bf16.msra.mxu1 %v329_v10  ;;  %s1266_s26 = sshll.u32 %s258_s20, 4  ;;  %s1940_s25 = scalar_lea.sflag [#allocation5], %s258_s20 }
  0x3c   : > { %1348 = vmatprep.subr.bf16.mxu1 %v1626_v0  ;;  %s260_s13 = scalar_lea.vmem [#allocation6], %s1266_s26  ;;  %p1998_p9 = scmp.ne.s32.totalorder %s1991_s7, 0 }
  0x3d   : > { %1327 = vmatpush3.bf16.msra.mxu0 %v277_v14  ;;  %s1186_s11 = sshll.u32 %s260_s13, 4  ;;  %s1936_s11 = int_to_ptr.vmem [resolvable:$true] %s1186_s11 }
  0x3e   : > { %1340 = vmatprep.subr.bf16.mxu0 %v1626_v0  ;;  %1337 = vmatmul.mubr.msk.bf16.vlgmr.msra.gmra.mrb[0].mxu1 %vm278_vm0, %v271_v15  ;;  %s1555_s15 = scalar_lea.vmem %s1936_s11, 256 }
  0x3f   : > { %1350 = vmatprep.mubr.msk.bf16.mxu1 %vm1627_vm1, %v1626_v0  ;;  %p1556_p6 = scmp.ne.s32.totalorder %s1936_s11, %s1555_s15 }
  0x40   : > { %1329 = vmatmul.mubr.msk.bf16.vlgmr.msra.gmra.mrb[0].mxu0 %vm278_vm0, %v271_v15 }
  0x41   : > { %1344 = vmatprep.mubr.msk.bf16.mxu0 %vm1627_vm1, %v1626_v0  ;;  %1341 = vmatpush3.bf16.msra.mxu0 %v376_v19  ;;  %p1557_p10 = pnand %p1556_p6, %p1998_p9 }
  0x42   : > { %1342 = vmatprep.subr.bf16.mxu0 %v1626_v0 }
  0x43   : > { %p1558_p12 = pneg %p1557_p10 }
  0x45   : > { %1343 = vmatpush3.bf16.msra.mxu0 %v377_v21 }
  0x46   : > { %1354 = vmatprep.subr.bf16.mxu0 %v1626_v0 }
  0x48   : > { %1345 = vmatmul.mubr.msk.bf16.vlgmr.msra.gmra.mrb[4].mxu0 %vm278_vm0, %v271_v15 }
  0x49   : > { %1356 = vmatprep.mubr.msk.bf16.mxu0 %vm1627_vm1, %v1626_v0 }
 0x111   : > { %v364_v22 = vpop.f32.mrb[0].mxu1 }
 0x112   : > { %v1338_v23 = vpop.f32.mrb[1].mxu1 }
 0x113   : > { %v316_v24 = vpop.f32.mrb[0].mxu0  ;;  %v367_v25 = vpop.f32.mrb[2].mxu1 }
 0x114   : > { %v1330_v26 = vpop.f32.mrb[1].mxu0  ;;  %v1801_v27 = vpack.c.bf16 %v367_v25, %v364_v22  ;;  %v1339_v28 = vpop.f32.mrb[3].mxu1 }
 0x115   : > { %v319_v29 = vpop.f32.mrb[2].mxu0 }
 0x116   : > { %v1804_v30 = vpack.c.bf16 %v319_v29, %v316_v24  ;;  %v1331_v31 = vpop.f32.mrb[3].mxu0  ;;  %605 = vrot.lane.b32.xlu1 %v1801_v27, %s1628_s16  ;;  %v427_v32 = vsel %vm422_vm2, %v1801_v27, 0 }
 0x117   : > { %1349 = vmatpush3.bf16.xpose.msra.mxu1 %v427_v32 }
 0x118   : > { %1360 = vmatprep.subr.bf16.mxu1 %v1626_v0 }
 0x11a   : > { %602 = vrot.lane.b32.xlu1 %v1804_v30, %s1628_s16 }
 0x11b   : > { %v412_v39 = vpop.f32.mrb[4].mxu0 }
 0x11c   : > { %v1346_v40 = vpop.f32.mrb[5].mxu0 }
 0x11d   : > { %v415_v41 = vpop.f32.mrb[6].mxu0 }
 0x11e   : > { %1351 = vmatmul.mubr.msk.bf16.vlgmr.msra.gmra.mrb[4].mxu1 %vm422_vm2, %v1804_v30  ;;  %v1822_v42 = vpack.c.bf16 %v415_v41, %v412_v39  ;;  %v1347_v43 = vpop.f32.mrb[7].mxu0 }
 0x11f   : > { %1362 = vmatprep.mubr.msk.bf16.mxu1 %vm1627_vm1, %v1626_v0  ;;  %1361 = vmatpush3.bf16.msra.mxu1 %v552_v60  ;;  %v547_v43 = vld [vmem:[#allocation2] sm:$0xff] }
 0x120   : > { %1355 = vmatpush3.bf16.msra.mxu0 %v1822_v42  ;;  %1372 = vmatprep.subr.bf16.mxu1 %v1626_v0 }
 0x121   : > { %1366 = vmatprep.subr.bf16.mxu0 %v1626_v0 }
 0x188   : > { %v606_v53 = vpop.permute.xlu1 %605 }
 0x189   : > { %v611_v56 = vsel %vm422_vm2, %v606_v53, 0 }
 0x18c   : > { %v603_v57 = vpop.permute.xlu1 %602 }
 0x1f1   : > { %v463_v33 = vpop.f32.mrb[4].mxu1 }
 0x1f2   : > { %v1352_v34 = vpop.f32.mrb[5].mxu1  ;;  %v470_v35 = vsel %vm422_vm2, %v463_v33, -inf }
 0x1f3   : > { %471 = vmax.xlane.f32.xlu0 %v470_v35  ;;  %v466_v36 = vpop.f32.mrb[6].mxu1 }
 0x1f4   : > { %v1353_v37 = vpop.f32.mrb[7].mxu1  ;;  %v473_v38 = vsel %vm422_vm2, %v466_v36, -inf }
 0x1f7   : > { %474 = vmax.xlane.f32.xlu0 %v473_v38 }
 0x280   : > { %v472_v44 = vpop.xlane.xlu0 %471 }
 0x281   : > { %v476_v45 = vsub.f32 %v463_v33, %v472_v44  ;;  %v488_v61 = vsub.f32 0.0, %v472_v44 }
 0x283   : > { %v478_v46 = vmul.f32 1.442695, %v476_v45  ;;  %v490_v63 = vmul.f32 1.442695, %v488_v61  ;;  %v548_v45 = vld [vmem:[#allocation2 + $0x8] sm:$0xff] }
 0x284   : > { %v475_v47 = vpop.xlane.xlu0 %474 }
 0x285   : > { %1479 = vpow2.f32 %v478_v46  ;;  %v477_v48 = vsub.f32 %v466_v36, %v475_v47  ;;  %v489_v62 = vsub.f32 0.0, %v475_v47 }
 0x287   : > { %v480_v49 = vmul.f32 1.442695, %v477_v48  ;;  %v492_v1 = vmul.f32 1.442695, %v489_v62 }
 0x289   : > { %1481 = vpow2.f32 %v480_v49 }
 0x28a   : > { %1483 = vpow2.f32 %v490_v63 }
 0x28b   : > { %1485 = vpow2.f32 %v492_v1 }
 0x28f   : > { %v1480_v50 = vpop.eup %1479 }
 0x290   : > { %v482_v51 = vsel %vm422_vm2, %v1480_v50, 0.0 }
 0x291   : > { %483 = vadd.xlane.f32.xlu0 %v482_v51  ;;  %v738_v51 = vld [vmem:[%s1985_s4 + $0x10] sm:$0xff] }
 0x293   : > { %v1482_v52 = vpop.eup %1481 }
 0x294   : > { %v485_v54 = vsel %vm422_vm2, %v1482_v52, 0.0  ;;  %v498_v55 = vpack.c.bf16 %v1482_v52, %v1480_v50  ;;  %v1484_v2 = vpop.eup %1483 }
 0x295   : > { %486 = vadd.xlane.f32.xlu1 %v485_v54  ;;  %v1486_v3 = vpop.eup %1485  ;;  %v494_v5 = vmul.f32 8.0, %v1484_v2 }
 0x296   : > { %1357 = vmatmul.mubr.msk.bf16.vlgmr.msra.gmra.mrb[8].mxu0 %vm422_vm2, %v498_v55  ;;  %v495_v8 = vmul.f32 8.0, %v1486_v3 }
 0x297   : > { %1367 = vmatpush3.bf16.xpose.msra.mxu0 %v611_v56  ;;  %1368 = vmatprep.mubr.msk.bf16.mxu0 %vm1627_vm1, %v1626_v0 }
 0x298   : > { %1378 = vmatprep.subr.bf16.mxu0 %v1626_v0 }
 0x29e   : > { %1369 = vmatmul.mubr.msk.bf16.vlgmr.msra.gmra.mrb[12].mxu0 %vm422_vm2, %v603_v57 }
 0x29f   : > { %1380 = vmatprep.mubr.msk.bf16.mxu0 %vm1627_vm1, %v1626_v0 }
 0x2a6   : > { %789 = vrot.lane.b32.xlu1 %v1804_v30, %s1629_s17 }
 0x2a7   : > { %684 = vrot.lane.b32.xlu0 %v1822_v42, %s1628_s16  ;;  %s1631_s16 = smov [#allocation6]  }
 0x31e   : > { %v484_v4 = vpop.xlane.xlu0 %483 }
 0x31f   : > { %v496_v7 = vsub.f32 %v484_v4, %v494_v5 }
 0x321   : > { %1487 = vrcp.f32 %v496_v7 }
 0x322   : > { %v487_v6 = vpop.xlane.xlu1 %486  ;;  %v685_v19 = vpop.permute.xlu0 %684 }
 0x323   : > { %v497_v9 = vsub.f32 %v487_v6, %v495_v8 }
 0x325   : > { %1489 = vrcp.f32 %v497_v9 }
 0x326   : > { %v790_v41 = vpop.permute.xlu1 %789 }
 0x32b   : > { %v1488_v10 = vpop.eup %1487 }
 0x32f   : > { %v1490_v14 = vpop.eup %1489 }
 0x369   : > { %v536_v11 = vpop.f32.mrb[8].mxu0 }
 0x36a   : > { %v545_v12 = vmul.f32 %v1488_v10, %v536_v11  ;;  %v1358_v13 = vpop.f32.mrb[9].mxu0 }
 0x36b   : > { %v539_v15 = vpop.f32.mrb[10].mxu0 }
 0x36c   : > { %v546_v16 = vmul.f32 %v1490_v14, %v539_v15  ;;  %v1359_v17 = vpop.f32.mrb[11].mxu0 }
 0x36e   : > { %v549_v18 = vpack.c.bf16 %v546_v16, %v545_v12 }
 0x370   : > { %1363 = vmatmul.mubr.msk.bf16.vlgmr.msra.gmra.mrb[8].mxu1 %vm422_vm2, %v549_v18 }
 0x371   : > { %1373 = vmatpush3.bf16.msra.mxu1 %v685_v19  ;;  %v647_v20 = vpop.f32.mrb[12].mxu0  ;;  %1374 = vmatprep.mubr.msk.bf16.mxu1 %vm1627_vm1, %v1626_v0 }
 0x372   : > { %v1370_v21 = vpop.f32.mrb[13].mxu0  ;;  %v654_v22 = vsel %vm422_vm2, %v647_v20, -inf  ;;  %1384 = vmatprep.subr.bf16.mxu1 %v1626_v0 }
 0x373   : > { %655 = vmax.xlane.f32.xlu0 %v654_v22  ;;  %v650_v23 = vpop.f32.mrb[14].mxu0 }
 0x374   : > { %v1371_v24 = vpop.f32.mrb[15].mxu0  ;;  %v657_v25 = vsel %vm422_vm2, %v650_v23, -inf }
 0x377   : > { %658 = vmax.xlane.f32.xlu0 %v657_v25 }
 0x38d   : > { %791 = vrot.lane.b32.xlu0 %v1801_v27, %s1629_s17 }
 0x400   : > { %v656_v26 = vpop.xlane.xlu0 %655 }
 0x401   : > { %v660_v28 = vsub.f32 %v647_v20, %v656_v26  ;;  %v672_v53 = vsub.f32 0.0, %v656_v26 }
 0x403   : > { %v662_v29 = vmul.f32 1.442695, %v660_v28  ;;  %v674_v55 = vmul.f32 1.442695, %v672_v53 }
 0x404   : > { %v659_v31 = vpop.xlane.xlu0 %658 }
 0x405   : > { %1491 = vpow2.f32 %v662_v29  ;;  %v661_v32 = vsub.f32 %v650_v23, %v659_v31  ;;  %v673_v54 = vsub.f32 0.0, %v659_v31 }
 0x407   : > { %v664_v33 = vmul.f32 1.442695, %v661_v32  ;;  %v676_v56 = vmul.f32 1.442695, %v673_v54 }
 0x408   : > { %v792_v37 = vpop.permute.xlu0 %791 }
 0x409   : > { %1493 = vpow2.f32 %v664_v33  ;;  %v797_v40 = vsel %vm422_vm2, %v792_v37, 0 }
 0x40a   : > { %1495 = vpow2.f32 %v674_v55 }
 0x40b   : > { %1497 = vpow2.f32 %v676_v56 }
 0x40f   : > { %v1492_v34 = vpop.eup %1491 }
 0x410   : > { %v666_v35 = vsel %vm422_vm2, %v1492_v34, 0.0 }
 0x411   : > { %667 = vadd.xlane.f32.xlu0 %v666_v35 }
 0x413   : > { %v1494_v36 = vpop.eup %1493 }
 0x414   : > { %v669_v38 = vsel %vm422_vm2, %v1494_v36, 0.0  ;;  %v682_v39 = vpack.c.bf16 %v1494_v36, %v1492_v34  ;;  %v1496_v57 = vpop.eup %1495 }
 0x415   : > { %670 = vadd.xlane.f32.xlu1 %v669_v38  ;;  %v1498_v58 = vpop.eup %1497  ;;  %v678_v60 = vmul.f32 8.0, %v1496_v57 }
 0x416   : > { %1375 = vmatmul.mubr.msk.bf16.vlgmr.msra.gmra.mrb[12].mxu1 %vm422_vm2, %v682_v39  ;;  %v679_v63 = vmul.f32 8.0, %v1498_v58 }
 0x417   : > { %1385 = vmatpush3.bf16.xpose.msra.mxu1 %v797_v40  ;;  %1386 = vmatprep.mubr.msk.bf16.mxu1 %vm1627_vm1, %v1626_v0 }
 0x418   : > { %1396 = vmatprep.subr.bf16.mxu1 %v1626_v0 }
 0x41e   : > { %1387 = vmatmul.mubr.msk.bf16.vlgmr.msra.gmra.mrb[16].mxu1 %vm422_vm2, %v790_v41  ;;  %v923_v41 = vld [vmem:[%s1985_s4 + $0x20] sm:$0xff] }
 0x41f   : > { %1398 = vmatprep.mubr.msk.bf16.mxu1 %vm1627_vm1, %v1626_v0 }
 0x426   : > { %976 = vrot.lane.b32.xlu1 %v1801_v27, %s1630_s28  ;;  %v739_v27 = vld [vmem:[%s1985_s4 + $0x18] sm:$0xff] }
 0x427   : > { %v740_v52 = vpack.c.bf16 %v739_v27, %v738_v51 }
 0x429   : > { %1379 = vmatpush3.bf16.msra.mxu0 %v740_v52 }
 0x42a   : > { %1390 = vmatprep.subr.bf16.mxu0 %v1626_v0 }
 0x443   : > { %v590_v44 = vpop.f32.mrb[8].mxu1 }
 0x444   : > { %v597_v46 = vadd.f32 %v590_v44, %v547_v43  ;;  %v1364_v47 = vpop.f32.mrb[9].mxu1  ;;  %v924_v43 = vld [vmem:[%s1985_s4 + $0x28] sm:$0xff] }
 0x445   : > { %v593_v48 = vpop.f32.mrb[10].mxu1  ;;  %v925_v44 = vpack.c.bf16 %v924_v43, %v923_v41 }
 0x446   : > { %599 = vst.msk [vmem:[#allocation2] sm:$0xff] %vm278_vm0, %v597_v46  ;;  %v598_v49 = vadd.f32 %v593_v48, %v548_v45  ;;  %v1365_v50 = vpop.f32.mrb[11].mxu1 }
 0x447   : > { %1397 = vmatpush3.bf16.msra.mxu1 %v925_v44 }
 0x448   : > { %600 = vst.msk [vmem:[#allocation2 + $0x8] sm:$0xff] %vm278_vm0, %v598_v49  ;;  %1408 = vmatprep.subr.bf16.mxu1 %v1626_v0 }
 0x44d   : > { %v735_v33 = vld [vmem:[#allocation2] sm:$0xff] }
 0x44f   : > { %v736_v37 = vld [vmem:[#allocation2 + $0x8] sm:$0xff] }
 0x49e   : > { %v668_v59 = vpop.xlane.xlu0 %667 }
 0x49f   : > { %v680_v62 = vsub.f32 %v668_v59, %v678_v60 }
 0x4a1   : > { %1499 = vrcp.f32 %v680_v62 }
 0x4a2   : > { %v671_v61 = vpop.xlane.xlu1 %670 }
 0x4a3   : > { %v681_v1 = vsub.f32 %v671_v61, %v679_v63 }
 0x4a5   : > { %1501 = vrcp.f32 %v681_v1 }
 0x4a6   : > { %v977_v28 = vpop.permute.xlu1 %976 }
 0x4a7   : > { %v982_v31 = vsel %vm422_vm2, %v977_v28, 0  ;;  %v1109_v28 = vld [vmem:[%s1985_s4 + $0x38] sm:$0xff] }
 0x4ab   : > { %v1500_v2 = vpop.eup %1499 }
 0x4af   : > { %v1502_v6 = vpop.eup %1501 }
 0x4e9   : > { %v724_v3 = vpop.f32.mrb[12].mxu1 }
 0x4ea   : > { %v733_v4 = vmul.f32 %v1500_v2, %v724_v3  ;;  %v1376_v5 = vpop.f32.mrb[13].mxu1 }
 0x4eb   : > { %v727_v7 = vpop.f32.mrb[14].mxu1 }
 0x4ec   : > { %v734_v8 = vmul.f32 %v1502_v6, %v727_v7  ;;  %v1377_v9 = vpop.f32.mrb[15].mxu1 }
 0x4ee   : > { %v737_v10 = vpack.c.bf16 %v734_v8, %v733_v4 }
 0x4f0   : > { %1381 = vmatmul.mubr.msk.bf16.vlgmr.msra.gmra.mrb[16].mxu0 %vm422_vm2, %v737_v10 }
 0x4f1   : > { %v833_v11 = vpop.f32.mrb[16].mxu1  ;;  %1392 = vmatprep.mubr.msk.bf16.mxu0 %vm1627_vm1, %v1626_v0 }
 0x4f2   : > { %v1388_v12 = vpop.f32.mrb[17].mxu1  ;;  %v840_v13 = vsel %vm422_vm2, %v833_v11, -inf }
 0x4f3   : > { %841 = vmax.xlane.f32.xlu0 %v840_v13  ;;  %v836_v14 = vpop.f32.mrb[18].mxu1 }
 0x4f4   : > { %v1389_v15 = vpop.f32.mrb[19].mxu1  ;;  %v843_v16 = vsel %vm422_vm2, %v836_v14, -inf }
 0x4f7   : > { %844 = vmax.xlane.f32.xlu0 %v843_v16 }
 0x50d   : > { %869 = vrot.lane.b32.xlu0 %v1822_v42, %s1629_s17  ;;  %s1559_s17 = sshll.u32 %s1631_s16, 4  ;;  %s1560_s17 = int_to_ptr.vmem [resolvable:$false] %s1559_s17 }
 0x50e   : > { %s1561_s18 = scalar_lea.vmem %s1560_s17, 512  ;;  %p1562_p2 = scmp.lt.s32.totalorder %s1936_s11, %s1560_s17 }
 0x50f   : > { %p1563_p3 = scmp.lt.s32.totalorder %s1561_s18, %s1555_s15 }
 0x511   : > { %974 = vrot.lane.b32.xlu0 %v1804_v30, %s1630_s28  ;;  %p1564_p4 = por %p1563_p3, %p1562_p2 }
 0x513   : > { %p1565_p7 = pnand %p1564_p4, %p1558_p12 }
 0x580   : > { %v842_v17 = vpop.xlane.xlu0 %841 }
 0x581   : > { %v846_v18 = vsub.f32 %v833_v11, %v842_v17  ;;  %v858_v45 = vsub.f32 0.0, %v842_v17 }
 0x583   : > { %v848_v19 = vmul.f32 1.442695, %v846_v18  ;;  %v860_v47 = vmul.f32 1.442695, %v858_v45 }
 0x584   : > { %v845_v20 = vpop.xlane.xlu0 %844 }
 0x585   : > { %1503 = vpow2.f32 %v848_v19  ;;  %v847_v21 = vsub.f32 %v836_v14, %v845_v20  ;;  %v859_v46 = vsub.f32 0.0, %v845_v20 }
 0x587   : > { %v850_v22 = vmul.f32 1.442695, %v847_v21  ;;  %v862_v48 = vmul.f32 1.442695, %v859_v46 }
 0x588   : > { %v870_v23 = vpop.permute.xlu0 %869 }
 0x589   : > { %1505 = vpow2.f32 %v850_v22  ;;  %1391 = vmatpush3.bf16.msra.mxu0 %v870_v23 }
 0x58a   : > { %1402 = vmatprep.subr.bf16.mxu0 %v1626_v0  ;;  %1507 = vpow2.f32 %v860_v47 }
 0x58b   : > { %1509 = vpow2.f32 %v862_v48 }
 0x58c   : > { %v975_v32 = vpop.permute.xlu0 %974 }
 0x58f   : > { %v1504_v24 = vpop.eup %1503 }
 0x590   : > { %v852_v25 = vsel %vm422_vm2, %v1504_v24, 0.0 }
 0x591   : > { %853 = vadd.xlane.f32.xlu0 %v852_v25 }
 0x593   : > { %v1506_v26 = vpop.eup %1505 }
 0x594   : > { %v855_v30 = vsel %vm422_vm2, %v1506_v26, 0.0  ;;  %v868_v29 = vpack.c.bf16 %v1506_v26, %v1504_v24  ;;  %v1508_v49 = vpop.eup %1507  ;;  %v1108_v26 = vld [vmem:[%s1985_s4 + $0x30] sm:$0xff] }
 0x595   : > { %856 = vadd.xlane.f32.xlu1 %v855_v30  ;;  %v1510_v50 = vpop.eup %1509  ;;  %v864_v27 = vmul.f32 8.0, %v1508_v49  ;;  %v1110_v30 = vpack.c.bf16 %v1109_v28, %v1108_v26 }
 0x596   : > { %1393 = vmatmul.mubr.msk.bf16.vlgmr.msra.gmra.mrb[20].mxu0 %vm422_vm2, %v868_v29  ;;  %v865_v54 = vmul.f32 8.0, %v1510_v50 }
 0x597   : > { %1403 = vmatpush3.bf16.xpose.msra.mxu0 %v982_v31  ;;  %1404 = vmatprep.mubr.msk.bf16.mxu0 %vm1627_vm1, %v1626_v0 }
 0x598   : > { %1414 = vmatprep.subr.bf16.mxu0 %v1626_v0 }
 0x59e   : > { %1405 = vmatmul.mubr.msk.bf16.vlgmr.msra.gmra.mrb[24].mxu0 %vm422_vm2, %v975_v32 }
 0x59f   : > { %1416 = vmatprep.mubr.msk.bf16.mxu0 %vm1627_vm1, %v1626_v0  ;;  %1415 = vmatpush3.bf16.msra.mxu0 %v1110_v30 }
 0x5c3   : > { %v778_v34 = vpop.f32.mrb[16].mxu0 }
 0x5c4   : > { %v785_v35 = vadd.f32 %v778_v34, %v735_v33  ;;  %v1382_v36 = vpop.f32.mrb[17].mxu0 }
 0x5c5   : > { %v781_v38 = vpop.f32.mrb[18].mxu0 }
 0x5c6   : > { %787 = vst.msk [vmem:[#allocation2] sm:$0xff] %vm278_vm0, %v785_v35  ;;  %v786_v39 = vadd.f32 %v781_v38, %v736_v37  ;;  %v1383_v40 = vpop.f32.mrb[19].mxu0 }
 0x5c8   : > { %788 = vst.msk [vmem:[#allocation2 + $0x8] sm:$0xff] %vm278_vm0, %v786_v39 }
 0x5cf   : > { %v921_v22 = vld [vmem:[#allocation2 + $0x8] sm:$0xff] }
 0x61e   : > { %v854_v51 = vpop.xlane.xlu0 %853 }
 0x61f   : > { %v866_v53 = vsub.f32 %v854_v51, %v864_v27 }
 0x621   : > { %1511 = vrcp.f32 %v866_v53 }
 0x622   : > { %v857_v52 = vpop.xlane.xlu1 %856 }
 0x623   : > { %v867_v55 = vsub.f32 %v857_v52, %v865_v54 }
 0x625   : > { %1513 = vrcp.f32 %v867_v55 }
 0x62b   : > { %v1512_v56 = vpop.eup %1511 }
 0x62f   : > { %v1514_v60 = vpop.eup %1513 }
 0x669   : > { %v909_v57 = vpop.f32.mrb[20].mxu0 }
 0x66a   : > { %v918_v58 = vmul.f32 %v1512_v56, %v909_v57  ;;  %v1394_v59 = vpop.f32.mrb[21].mxu0 }
 0x66b   : > { %v912_v61 = vpop.f32.mrb[22].mxu0  ;;  %v1284_v59 = vld [vmem:[%s1986_s5] ss:$0 sm:$0xff] }
 0x66c   : > { %v919_v62 = vmul.f32 %v1514_v60, %v912_v61  ;;  %v1395_v63 = vpop.f32.mrb[23].mxu0 }
 0x66e   : > { %v922_v1 = vpack.c.bf16 %v919_v62, %v918_v58 }
 0x670   : > { %1399 = vmatmul.mubr.msk.bf16.vlgmr.msra.gmra.mrb[20].mxu1 %vm422_vm2, %v922_v1 }
 0x671   : > { %v1018_v2 = vpop.f32.mrb[24].mxu0  ;;  %1410 = vmatprep.mubr.msk.bf16.mxu1 %vm1627_vm1, %v1626_v0 }
 0x672   : > { %v1406_v3 = vpop.f32.mrb[25].mxu0  ;;  %v1025_v4 = vsel %vm422_vm2, %v1018_v2, -inf }
 0x673   : > { %1026 = vmax.xlane.f32.xlu0 %v1025_v4  ;;  %v1021_v5 = vpop.f32.mrb[26].mxu0 }
 0x674   : > { %v1407_v6 = vpop.f32.mrb[27].mxu0  ;;  %v1028_v7 = vsel %vm422_vm2, %v1021_v5, -inf }
 0x677   : > { %1029 = vmax.xlane.f32.xlu0 %v1028_v7 }
 0x68d   : > { %1054 = vrot.lane.b32.xlu0 %v1822_v42, %s1630_s28  ;;  %v920_v42 = vld [vmem:[#allocation2] sm:$0xff] }
 0x700   : > { %v1027_v8 = vpop.xlane.xlu0 %1026 }
 0x701   : > { %v1031_v9 = vsub.f32 %v1018_v2, %v1027_v8  ;;  %v1043_v29 = vsub.f32 0.0, %v1027_v8 }
 0x703   : > { %v1033_v10 = vmul.f32 1.442695, %v1031_v9  ;;  %v1045_v32 = vmul.f32 1.442695, %v1043_v29 }
 0x704   : > { %v1030_v11 = vpop.xlane.xlu0 %1029 }
 0x705   : > { %1515 = vpow2.f32 %v1033_v10  ;;  %v1032_v12 = vsub.f32 %v1021_v5, %v1030_v11  ;;  %v1044_v31 = vsub.f32 0.0, %v1030_v11 }
 0x707   : > { %v1035_v13 = vmul.f32 1.442695, %v1032_v12  ;;  %v1047_v33 = vmul.f32 1.442695, %v1044_v31 }
 0x708   : > { %v1055_v0 = vpop.permute.xlu0 %1054 }
 0x709   : > { %1517 = vpow2.f32 %v1035_v13  ;;  %1409 = vmatpush3.bf16.msra.mxu1 %v1055_v0 }
 0x70a   : > { %1519 = vpow2.f32 %v1045_v32 }
 0x70b   : > { %1521 = vpow2.f32 %v1047_v33 }
 0x70f   : > { %v1516_v14 = vpop.eup %1515 }
 0x710   : > { %v1037_v15 = vsel %vm422_vm2, %v1516_v14, 0.0 }
 0x711   : > { %1038 = vadd.xlane.f32.xlu1 %v1037_v15 }
 0x713   : > { %v1518_v16 = vpop.eup %1517 }
 0x714   : > { %v1040_v17 = vsel %vm422_vm2, %v1518_v16, 0.0  ;;  %v1053_v18 = vpack.c.bf16 %v1518_v16, %v1516_v14  ;;  %v1520_v35 = vpop.eup %1519 }
 0x715   : > { %1041 = vadd.xlane.f32.xlu1 %v1040_v17  ;;  %v1522_v36 = vpop.eup %1521  ;;  %v1049_v37 = vmul.f32 8.0, %v1520_v35 }
 0x716   : > { %1411 = vmatmul.mubr.msk.bf16.vlgmr.msra.gmra.mrb[24].mxu1 %vm422_vm2, %v1053_v18  ;;  %v1050_v40 = vmul.f32 8.0, %v1522_v36 }
 0x743   : > { %v963_v19 = vpop.f32.mrb[20].mxu1 }
 0x744   : > { %v970_v20 = vadd.f32 %v963_v19, %v920_v42  ;;  %v1400_v21 = vpop.f32.mrb[21].mxu1 }
 0x745   : > { %v966_v23 = vpop.f32.mrb[22].mxu1 }
 0x746   : > { %972 = vst.msk [vmem:[#allocation2] sm:$0xff] %vm278_vm0, %v970_v20  ;;  %v971_v24 = vadd.f32 %v966_v23, %v921_v22  ;;  %v1401_v25 = vpop.f32.mrb[23].mxu1 }
 0x748   : > { %973 = vst.msk [vmem:[#allocation2 + $0x8] sm:$0xff] %vm278_vm0, %v971_v24 }
 0x74d   : > { %v1105_v27 = vld [vmem:[#allocation2] sm:$0xff] }
 0x74f   : > { %v1106_v55 = vld [vmem:[#allocation2 + $0x8] sm:$0xff] }
 0x79e   : > { %v1039_v34 = vpop.xlane.xlu1 %1038 }
 0x79f   : > { %v1051_v39 = vsub.f32 %v1039_v34, %v1049_v37 }
 0x7a1   : > { %1523 = vrcp.f32 %v1051_v39 }
 0x7a2   : > { %v1042_v38 = vpop.xlane.xlu1 %1041 }
 0x7a3   : > { %v1052_v41 = vsub.f32 %v1042_v38, %v1050_v40 }
 0x7a5   : > { %1525 = vrcp.f32 %v1052_v41 }
 0x7ab   : > { %v1524_v43 = vpop.eup %1523 }
 0x7af   : > { %v1526_v47 = vpop.eup %1525 }
 0x7e9   : > { %v1094_v44 = vpop.f32.mrb[24].mxu1 }
 0x7ea   : > { %v1103_v45 = vmul.f32 %v1524_v43, %v1094_v44  ;;  %v1412_v46 = vpop.f32.mrb[25].mxu1 }
 0x7eb   : > { %v1097_v48 = vpop.f32.mrb[26].mxu1 }
 0x7ec   : > { %v1104_v49 = vmul.f32 %v1526_v47, %v1097_v48  ;;  %v1413_v50 = vpop.f32.mrb[27].mxu1 }
 0x7ee   : > { %v1107_v51 = vpack.c.bf16 %v1104_v49, %v1103_v45 }
 0x7f0   : > { %1417 = vmatmul.mubr.msk.bf16.vlgmr.msra.gmra.mrb[28].mxu0 %vm422_vm2, %v1107_v51 }
 0x8c3   : > { %v1148_v52 = vpop.f32.mrb[28].mxu0 }
 0x8c4   : > { %v1155_v53 = vadd.f32 %v1148_v52, %v1105_v27  ;;  %v1418_v54 = vpop.f32.mrb[29].mxu0 }
 0x8c5   : > { %v1151_v56 = vpop.f32.mrb[30].mxu0 }
 0x8c6   : > { %1157 = vst.msk [vmem:[#allocation2] sm:$0xff] %vm278_vm0, %v1155_v53  ;;  %v1156_v57 = vadd.f32 %v1151_v56, %v1106_v55  ;;  %v1419_v58 = vpop.f32.mrb[31].mxu0 }
 0x8c8   : > { %1158 = vst.msk [vmem:[#allocation2 + $0x8] sm:$0xff] %vm278_vm0, %v1156_v57 }
 0x8cd   : > { %v1159_v60 = vld [vmem:[#allocation2] sm:$0xff] }
 0x8ce   : > { %v1168_v61 = vadd.f32 %v1284_v59, %v1159_v60 }
 0x8cf   : > { %v1160_v62 = vld [vmem:[#allocation2 + $0x8] sm:$0xff] }
 0x8d0   : > { %v1169_v63 = vadd.f32 %v1284_v59, %v1160_v62  ;;  %1170 = vst.msk [vmem:[%s260_s13] sm:$0xff] %vm278_vm0, %v1168_v61 }
 0x8d2   : > { %1171 = vst.msk [vmem:[%s260_s13 + $0x8] sm:$0xff] %vm278_vm0, %v1169_v63 }
 0x8d3   : > { %1568 = shalt.err (!%p1565_p7)
}
 0x8d4   : > { %s1569_s19 = scalar_lea.hbm %s1934_s9, 256  ;;  %s1573_s28 = scalar_lea.hbm %s1987_s6, 512 }
 0x8d5   : > { %p1570_p8 = scmp.ne.s32.totalorder %s1934_s9, %s1569_s19  ;;  %p1574_p1 = scmp.lt.u32.totalorder %s1934_s9, %s1987_s6 }
 0x8d6   : > { %p1575_p0 = scmp.lt.u32.totalorder %s1573_s28, %s1569_s19  ;;  %p1577_p6 = scmp.lt.u32.totalorder %s1569_s19, %s1934_s9 }
 0x8d7   : > { %p1571_p11 = pnand %p1570_p8, %p1998_p9 }
 0x8d8   : > { %p1576_p5 = por %p1575_p0, %p1574_p1 }
 0x8d9   : > { %p1572_p13 = pneg %p1571_p11 }
 0x8da   : > { %p1578_p10 = por %p1577_p6, %p1576_p5 }
 0x8dc   : > { %p1579_p12 = pnand %p1578_p10, %p1572_p13 }
 0x8de   : > { %1582 = shalt.err (!%p1579_p12)
}
 0x8df   : > { %s1632_s13 = smov 128   ;;  %s1633_s12 = smov 8  }
 0x8e0   : > { %1424 = dma.vmem_to_hbm [thread:$0]  (%p1998_p9), %s1936_s11, 256, %s1934_s9, %s1940_s25, %s1632_s13, %s1632_s13, %s1633_s12  }
 0x8e1 PF: > { %p1436_p2 = scmp.ge.s32.totalorder %s1621_s24, 2  ;;  %s1201_s14 = sand.u32 1, %s1609_s21  }
 0x8e2   : > { %p1999_p3 = scmp.ne.s32.totalorder %s1992_s8, 0  ;;  %s1202_s15 = scalar_lea.sflag [#allocation5], %s1201_s14 }
 0x8e4   : > { %p1431_p4 = pnand %p1436_p2, %p1999_p3 }
 0x8e6   : > { %1604 = dma.done.wait (!%p1431_p4), %s1202_s15, 256  }
 0x8e7   : > { %1606 = vsyncadd (!%p1431_p4), %s1202_s15, 4294967040  ;;  %p17_p7 = scmp.ge.s32.totalorder %s1694_s27, 4   ;;  %s2000_s21 = smov %s1613_s22 }
 0x8e8   : > { %s2001_s22 = smov %s1617_s23  ;;  %s2002_s23 = smov %s1705_s30 }
 0x8e9   : > { %s2003_s24 = smov %s1694_s27  ;;  %19 = sbr.rel (!%p17_p7) target bundleno = 4 (0x4), region = 84 }
 0x8f0   :  { %1207 = vsyncpa [#allocation4], 1 }
 0x8f1   :  { %1209 = vsyncpa [#allocation4 + $0x1], 1 }
 0x8f2   :  { %1210 = vsyncpa [#allocation5], 1 }
 0x8f3   :  { %1212 = vsyncpa [#allocation5 + $0x1], 1 }

// kernel: tpu_custom_call.1
= control target key start
LH: loop header
LB: loop body
LE: loop exit
PB: predicated region body
PF: predicated region fallthrough
CT: control target
= control target key end

     0   :  { %11 = vsyncpa [#allocation4], 0  ;;  %s1981_s0 = inlined_call_operand.vmem [shape: f32[32,32], index: 0, kind: input, shape index: {}]   ;;  %s1982_s1 = inlined_call_operand.vmem [shape: f32[32,64], index: 1, kind: input, shape index: {}]   ;;  %s1983_s2 = inlined_call_operand.vmem [shape: f32[32,64], index: 2, kind: input, shape index: {}]   ;;  %s1984_s3 = inlined_call_operand.hbm [shape: f32[32,64], index: 3, kind: input, shape index: {}]   ;;  %s1985_s4 = inlined_call_operand.vmem [shape: f32[64,32], index: 4, kind: input, shape index: {}]   ;;  %s1986_s5 = inlined_call_operand.vmem [shape: f32[1,32], index: 5, kind: input, shape index: {}]   ;;  %s1987_s6 = inlined_call_operand.hbm [shape: f32[32,32], index: 6, kind: output, shape index: {}]  }
   0x1   :  { %12 = vsyncpa [#allocation5], 0 }
   0x2   :  { %14 = vsyncpa [#allocation5 + $0x1], 0  ;;  %s1669_s21 = smov 0   ;;  %s1671_s22 = smov 0  }
   0x3   :  { %s1673_s23 = smov 0   ;;  %s1675_s24 = smov 0  }
   0x4 LB: > { %s1690_s25 = sadd.s32 4294967295, %s1621_s24   ;;  %s1260_s26 = sadd.s32 4294967294, %s1621_s24   ;;  %s1621_s24 = sphi %s1675_s24, %s2003_s24   ;;  %s1617_s23 = sphi %s1673_s23, %s2002_s23   ;;  %s1613_s22 = sphi %s1671_s22, %s2001_s22   ;;  %s1609_s21 = sphi %s1669_s21, %s2000_s21  }
   0x5   : > { %s1694_s27 = sadd.s32 1, %s1621_s24   ;;  %s158_s28 = sadd.s32 1, %s1617_s23 }
   0x6   : > { %s155_s29 = ssub.s32 %s1621_s24, %s1694_s27  ;;  %p168_p0 = scmp.ne.s32.totalorder %s1617_s23, %s1613_s22 }
   0x7   : > { %p156_p1 = scmp.eq.s32.totalorder %s155_s29, 0  ;;  %p169_p2 = scmp.eq.s32.totalorder %s1690_s25, 1 }
   0x8   : > { %p174_p3 = scmp.ne.s32.totalorder %s1613_s22, %s1609_s21  ;;  %p175_p4 = scmp.eq.s32.totalorder %s1260_s26, 1 }
   0x9   : > { %s1705_s30 = scalar_select %p156_p1, %s1617_s23, %s158_s28  }
   0xa   : > { %p1707_p5 = por %p169_p2, %p168_p0  ;;  %p1711_p6 = por %p175_p4, %p174_p3 }
   0xb   : > { %p1261_p7 = scmp.ge.s32.totalorder %s1621_s24, 1  ;;  %p182_p8 = scmp.lt.s32.totalorder %s1621_s24, 3 }
   0xc   : > { %s1991_s7 = scalar_select %p1707_p5, 1, 0 }
   0xd   : > { %s1992_s8 = scalar_select %p1711_p6, 1, 0 }
   0xe   : > { %p1988_p9 = scmp.eq.s32.totalorder %s1690_s25, 0  ;;  %p1718_p10 = pnand %p1261_p7, %p182_p8 }
   0xf   : > { %s1623_s10 = smov [#allocation3]   ;;  %s1527_s15 = scalar_lea.hbm %s1984_s3, 512 }
  0x10   : > { %s1993_s9 = scalar_select %p1718_p10, 1, 0 }
  0x11   : > { %s200_s11 = sshll.u32 %s1623_s10, 4  ;;  %p1426_p11 = pneg %p1718_p10  ;;  %s201_s11 = int_to_ptr.vmem [resolvable:$true] %s200_s11 }
  0x12   : > { %p1528_p13 = scmp.ne.s32.totalorder %s1984_s3, %s1527_s15  ;;  %p1534_p3 = scmp.lt.u32.totalorder %s1527_s15, %s1984_s3 }
  0x13   : > { %p1726_p12 = pnand %p1988_p9, %p1426_p11 }
  0x15   : > { %p1529_p0 = pneg %p1726_p12 }
  0x17   : > { %p1530_p1 = pnand %p1529_p0, %p1528_p13 }
  0x19   : > { %p1531_p2 = pneg %p1530_p1 }
  0x1b   : > { %p1536_p4 = pnand %p1534_p3, %p1531_p2 }
  0x1d   : > { %1539 = shalt.err (!%p1536_p4)
}
  0x1e   : > { %s1540_s20 = scalar_lea.vmem %s201_s11, 512  ;;  %p1548_p9 = scmp.lt.s32.totalorder %s201_s11, %s201_s11 }
  0x1f   : > { %p1541_p7 = scmp.ne.s32.totalorder %s201_s11, %s1540_s20  ;;  %p1549_p6 = scmp.lt.s32.totalorder %s1540_s20, %s1540_s20 }
  0x21   : > { %p1543_p8 = pnand %p1541_p7, %p1529_p0  ;;  %p1550_p5 = por %p1549_p6, %p1548_p9 }
  0x23   : > { %p1544_p11 = pneg %p1543_p8 }
  0x25   : > { %p1551_p10 = pnand %p1550_p5, %p1544_p11 }
  0x27   : > { %1554 = shalt.err (!%p1551_p10)
}
  0x28   : > { %s1624_s26 = smov 128   ;;  %s1625_s28 = smov 8  }
  0x29   : > { %1429 = dma.hbm_to_vmem [thread:$0]  (!%p1726_p12), %s1984_s3, 512, %s201_s11, [#allocation4], %s1624_s26, %s1624_s26, %s1625_s28  }
  0x2a   : > { %p1995_p13 = scmp.ne.s32.totalorder %s1993_s9, 0 }
  0x2b   : > { %p1996_p1 = scmp.eq.s32.totalorder (!%p1995_p13), %s1690_s25, 0 }
  0x2c   : > { %231 = sbr.rel (%p1995_p13) target bundleno = 2273 (0x8e1), region = 44 }
  0x33   : > { %1600 = dma.done.wait (%p1996_p1), [#allocation4], 512   ;;  %p1997_p0 = pmov %p1996_p1 }
  0x34   : > { %s1267_s13 = sshll.u32 %s1690_s25, 1  ;;  %vm278_vm0 = vcmask 261120   ;;  %v1626_v0 = vmov 0.0   ;;  %vm1627_vm1 = vmmov 0   ;;  %v324_v1 = vld [vmem:[%s1983_s2] sm:$0xff]  ;;  %v325_v2 = vld [vmem:[%s1983_s2 + $0x8] sm:$0xff] }
  0x35   : > { %1602 = vsyncadd (%p1997_p0), [#allocation4], 4294966784  ;;  %1332 = vmatprep.subr.bf16.mxu1 %v1626_v0  ;;  %1324 = vmatprep.subr.bf16.mxu0 %v1626_v0  ;;  %p262_p5 = scmp.lt.s32.totalorder %s1267_s13, 3  ;;  %420 = vst.msk [vmem:[#allocation2] sm:$0xff] %vm278_vm0, %v1626_v0  ;;  %v326_v3 = vld [vmem:[%s1983_s2 + $0x10] sm:$0xff]  ;;  %v328_v4 = vpack.c.bf16 %v325_v2, %v324_v1  ;;  %v327_v5 = vld [vmem:[%s1983_s2 + $0x18] sm:$0xff] }
  0x36   : > { %421 = vst.msk [vmem:[#allocation2 + $0x8] sm:$0xff] %vm278_vm0, %v1626_v0  ;;  %1336 = vmatprep.mubr.msk.bf16.mxu1 %vm1627_vm1, %v1626_v0  ;;  %1328 = vmatprep.mubr.msk.bf16.mxu0 %vm1627_vm1, %v1626_v0  ;;  %v272_v6 = vld [vmem:[%s1982_s1] sm:$0xff]  ;;  %v273_v7 = vld [vmem:[%s1982_s1 + $0x8] sm:$0xff]  ;;  %v274_v9 = vld [vmem:[%s1982_s1 + $0x10] sm:$0xff]  ;;  %v329_v10 = vpack.c.bf16 %v327_v5, %v326_v3  ;;  %vm422_vm2 = vcmask 130048   ;;  %s1628_s16 = smov 112  }
  0x37   : > { %s2005_s13 = smov (!%p262_p5, %s1267_s13), 3  ;;  %v276_v8 = vpack.c.bf16 %v273_v7, %v272_v6  ;;  %1333 = vmatpush3.bf16.msra.mxu1 %v328_v4  ;;  %v275_v13 = vld [vmem:[%s1982_s1 + $0x18] sm:$0xff]  ;;  %v372_v16 = vld [vmem:[#allocation3] sm:$0xff]  ;;  %v374_v18 = vld [vmem:[#allocation3 + $0x10] sm:$0xff]  ;;  %s1629_s17 = smov 96  }
  0x38   : > { %s1268_s9 = sshll.u32 %s2005_s13, 3  ;;  %1334 = vmatprep.subr.bf16.mxu1 %v1626_v0  ;;  %v277_v14 = vpack.c.bf16 %v275_v13, %v274_v9  ;;  %v373_v17 = vld [vmem:[#allocation3 + $0x8] sm:$0xff]  ;;  %v375_v20 = vld [vmem:[#allocation3 + $0x18] sm:$0xff]  ;;  %v550_v58 = vld [vmem:[%s1985_s4] sm:$0xff]  ;;  %s1630_s28 = smov 80  }
  0x39   : > { %s265_s20 = scalar_lea.vmem %s1981_s0, %s1268_s9  ;;  %1325 = vmatpush3.bf16.msra.mxu0 %v276_v8  ;;  %v376_v19 = vpack.c.bf16 %v373_v17, %v372_v16  ;;  %v377_v21 = vpack.c.bf16 %v375_v20, %v374_v18  ;;  %v551_v59 = vld [vmem:[%s1985_s4 + $0x8] sm:$0xff]  ;;  %s1290_s10 = sshll.u32 %s1690_s25, 8 }
  0x3a   : > { %v269_v11 = vld [vmem:[%s265_s20] sm:$0xff]  ;;  %v270_v12 = vld [vmem:[%s265_s20 + $0x8] sm:$0xff]  ;;  %1326 = vmatprep.subr.bf16.mxu0 %v1626_v0  ;;  %v552_v60 = vpack.c.bf16 %v551_v59, %v550_v58  ;;  %s258_s20 = sand.u32 1, %s1613_s22   ;;  %s1934_s9 = scalar_lea.hbm %s1987_s6, %s1290_s10 }
  0x3b   : > { %v271_v15 = vpack.c.bf16 %v270_v12, %v269_v11  ;;  %1335 = vmatpush3.bf16.msra.mxu1 %v329_v10  ;;  %s1266_s26 = sshll.u32 %s258_s20, 4  ;;  %s1940_s25 = scalar_lea.sflag [#allocation5], %s258_s20 }
  0x3c   : > { %1348 = vmatprep.subr.bf16.mxu1 %v1626_v0  ;;  %s260_s13 = scalar_lea.vmem [#allocation6], %s1266_s26  ;;  %p1998_p9 = scmp.ne.s32.totalorder %s1991_s7, 0 }
  0x3d   : > { %1327 = vmatpush3.bf16.msra.mxu0 %v277_v14  ;;  %s1186_s11 = sshll.u32 %s260_s13, 4  ;;  %s1936_s11 = int_to_ptr.vmem [resolvable:$true] %s1186_s11 }
  0x3e   : > { %1340 = vmatprep.subr.bf16.mxu0 %v1626_v0  ;;  %1337 = vmatmul.mubr.msk.bf16.vlgmr.msra.gmra.mrb[0].mxu1 %vm278_vm0, %v271_v15  ;;  %s1555_s15 = scalar_lea.vmem %s1936_s11, 256 }
  0x3f   : > { %1350 = vmatprep.mubr.msk.bf16.mxu1 %vm1627_vm1, %v1626_v0  ;;  %p1556_p6 = scmp.ne.s32.totalorder %s1936_s11, %s1555_s15 }
  0x40   : > { %1329 = vmatmul.mubr.msk.bf16.vlgmr.msra.gmra.mrb[0].mxu0 %vm278_vm0, %v271_v15 }
  0x41   : > { %1344 = vmatprep.mubr.msk.bf16.mxu0 %vm1627_vm1, %v1626_v0  ;;  %1341 = vmatpush3.bf16.msra.mxu0 %v376_v19  ;;  %p1557_p10 = pnand %p1556_p6, %p1998_p9 }
  0x42   : > { %1342 = vmatprep.subr.bf16.mxu0 %v1626_v0 }
  0x43   : > { %p1558_p12 = pneg %p1557_p10 }
  0x45   : > { %1343 = vmatpush3.bf16.msra.mxu0 %v377_v21 }
  0x46   : > { %1354 = vmatprep.subr.bf16.mxu0 %v1626_v0 }
  0x48   : > { %1345 = vmatmul.mubr.msk.bf16.vlgmr.msra.gmra.mrb[4].mxu0 %vm278_vm0, %v271_v15 }
  0x49   : > { %1356 = vmatprep.mubr.msk.bf16.mxu0 %vm1627_vm1, %v1626_v0 }
 0x111   : > { %v364_v22 = vpop.f32.mrb[0].mxu1 }
 0x112   : > { %v1338_v23 = vpop.f32.mrb[1].mxu1 }
 0x113   : > { %v316_v24 = vpop.f32.mrb[0].mxu0  ;;  %v367_v25 = vpop.f32.mrb[2].mxu1 }
 0x114   : > { %v1330_v26 = vpop.f32.mrb[1].mxu0  ;;  %v1801_v27 = vpack.c.bf16 %v367_v25, %v364_v22  ;;  %v1339_v28 = vpop.f32.mrb[3].mxu1 }
 0x115   : > { %v319_v29 = vpop.f32.mrb[2].mxu0 }
 0x116   : > { %v1804_v30 = vpack.c.bf16 %v319_v29, %v316_v24  ;;  %v1331_v31 = vpop.f32.mrb[3].mxu0  ;;  %605 = vrot.lane.b32.xlu1 %v1801_v27, %s1628_s16  ;;  %v427_v32 = vsel %vm422_vm2, %v1801_v27, 0 }
 0x117   : > { %1349 = vmatpush3.bf16.xpose.msra.mxu1 %v427_v32 }
 0x118   : > { %1360 = vmatprep.subr.bf16.mxu1 %v1626_v0 }
 0x11a   : > { %602 = vrot.lane.b32.xlu1 %v1804_v30, %s1628_s16 }
 0x11b   : > { %v412_v39 = vpop.f32.mrb[4].mxu0 }
 0x11c   : > { %v1346_v40 = vpop.f32.mrb[5].mxu0 }
 0x11d   : > { %v415_v41 = vpop.f32.mrb[6].mxu0 }
 0x11e   : > { %1351 = vmatmul.mubr.msk.bf16.vlgmr.msra.gmra.mrb[4].mxu1 %vm422_vm2, %v1804_v30  ;;  %v1822_v42 = vpack.c.bf16 %v415_v41, %v412_v39  ;;  %v1347_v43 = vpop.f32.mrb[7].mxu0 }
 0x11f   : > { %1362 = vmatprep.mubr.msk.bf16.mxu1 %vm1627_vm1, %v1626_v0  ;;  %1361 = vmatpush3.bf16.msra.mxu1 %v552_v60  ;;  %v547_v43 = vld [vmem:[#allocation2] sm:$0xff] }
 0x120   : > { %1355 = vmatpush3.bf16.msra.mxu0 %v1822_v42  ;;  %1372 = vmatprep.subr.bf16.mxu1 %v1626_v0 }
 0x121   : > { %1366 = vmatprep.subr.bf16.mxu0 %v1626_v0 }
 0x188   : > { %v606_v53 = vpop.permute.xlu1 %605 }
 0x189   : > { %v611_v56 = vsel %vm422_vm2, %v606_v53, 0 }
 0x18c   : > { %v603_v57 = vpop.permute.xlu1 %602 }
 0x1f1   : > { %v463_v33 = vpop.f32.mrb[4].mxu1 }
 0x1f2   : > { %v1352_v34 = vpop.f32.mrb[5].mxu1  ;;  %v470_v35 = vsel %vm422_vm2, %v463_v33, -inf }
 0x1f3   : > { %471 = vmax.xlane.f32.xlu0 %v470_v35  ;;  %v466_v36 = vpop.f32.mrb[6].mxu1 }
 0x1f4   : > { %v1353_v37 = vpop.f32.mrb[7].mxu1  ;;  %v473_v38 = vsel %vm422_vm2, %v466_v36, -inf }
 0x1f7   : > { %474 = vmax.xlane.f32.xlu0 %v473_v38 }
 0x280   : > { %v472_v44 = vpop.xlane.xlu0 %471 }
 0x281   : > { %v476_v45 = vsub.f32 %v463_v33, %v472_v44  ;;  %v488_v61 = vsub.f32 0.0, %v472_v44 }
 0x283   : > { %v478_v46 = vmul.f32 1.442695, %v476_v45  ;;  %v490_v63 = vmul.f32 1.442695, %v488_v61  ;;  %v548_v45 = vld [vmem:[#allocation2 + $0x8] sm:$0xff] }
 0x284   : > { %v475_v47 = vpop.xlane.xlu0 %474 }
 0x285   : > { %1479 = vpow2.f32 %v478_v46  ;;  %v477_v48 = vsub.f32 %v466_v36, %v475_v47  ;;  %v489_v62 = vsub.f32 0.0, %v475_v47 }
 0x287   : > { %v480_v49 = vmul.f32 1.442695, %v477_v48  ;;  %v492_v1 = vmul.f32 1.442695, %v489_v62 }
 0x289   : > { %1481 = vpow2.f32 %v480_v49 }
 0x28a   : > { %1483 = vpow2.f32 %v490_v63 }
 0x28b   : > { %1485 = vpow2.f32 %v492_v1 }
 0x28f   : > { %v1480_v50 = vpop.eup %1479 }
 0x290   : > { %v482_v51 = vsel %vm422_vm2, %v1480_v50, 0.0 }
 0x291   : > { %483 = vadd.xlane.f32.xlu0 %v482_v51  ;;  %v738_v51 = vld [vmem:[%s1985_s4 + $0x10] sm:$0xff] }
 0x293   : > { %v1482_v52 = vpop.eup %1481 }
 0x294   : > { %v485_v54 = vsel %vm422_vm2, %v1482_v52, 0.0  ;;  %v498_v55 = vpack.c.bf16 %v1482_v52, %v1480_v50  ;;  %v1484_v2 = vpop.eup %1483 }
 0x295   : > { %486 = vadd.xlane.f32.xlu1 %v485_v54  ;;  %v1486_v3 = vpop.eup %1485  ;;  %v494_v5 = vmul.f32 8.0, %v1484_v2 }
 0x296   : > { %1357 = vmatmul.mubr.msk.bf16.vlgmr.msra.gmra.mrb[8].mxu0 %vm422_vm2, %v498_v55  ;;  %v495_v8 = vmul.f32 8.0, %v1486_v3 }
 0x297   : > { %1367 = vmatpush3.bf16.xpose.msra.mxu0 %v611_v56  ;;  %1368 = vmatprep.mubr.msk.bf16.mxu0 %vm1627_vm1, %v1626_v0 }
 0x298   : > { %1378 = vmatprep.subr.bf16.mxu0 %v1626_v0 }
 0x29e   : > { %1369 = vmatmul.mubr.msk.bf16.vlgmr.msra.gmra.mrb[12].mxu0 %vm422_vm2, %v603_v57 }
 0x29f   : > { %1380 = vmatprep.mubr.msk.bf16.mxu0 %vm1627_vm1, %v1626_v0 }
 0x2a6   : > { %789 = vrot.lane.b32.xlu1 %v1804_v30, %s1629_s17 }
 0x2a7   : > { %684 = vrot.lane.b32.xlu0 %v1822_v42, %s1628_s16  ;;  %s1631_s16 = smov [#allocation6]  }
 0x31e   : > { %v484_v4 = vpop.xlane.xlu0 %483 }
 0x31f   : > { %v496_v7 = vsub.f32 %v484_v4, %v494_v5 }
 0x321   : > { %1487 = vrcp.f32 %v496_v7 }
 0x322   : > { %v487_v6 = vpop.xlane.xlu1 %486  ;;  %v685_v19 = vpop.permute.xlu0 %684 }
 0x323   : > { %v497_v9 = vsub.f32 %v487_v6, %v495_v8 }
 0x325   : > { %1489 = vrcp.f32 %v497_v9 }
 0x326   : > { %v790_v41 = vpop.permute.xlu1 %789 }
 0x32b   : > { %v1488_v10 = vpop.eup %1487 }
 0x32f   : > { %v1490_v14 = vpop.eup %1489 }
 0x369   : > { %v536_v11 = vpop.f32.mrb[8].mxu0 }
 0x36a   : > { %v545_v12 = vmul.f32 %v1488_v10, %v536_v11  ;;  %v1358_v13 = vpop.f32.mrb[9].mxu0 }
 0x36b   : > { %v539_v15 = vpop.f32.mrb[10].mxu0 }
 0x36c   : > { %v546_v16 = vmul.f32 %v1490_v14, %v539_v15  ;;  %v1359_v17 = vpop.f32.mrb[11].mxu0 }
 0x36e   : > { %v549_v18 = vpack.c.bf16 %v546_v16, %v545_v12 }
 0x370   : > { %1363 = vmatmul.mubr.msk.bf16.vlgmr.msra.gmra.mrb[8].mxu1 %vm422_vm2, %v549_v18 }
 0x371   : > { %1373 = vmatpush3.bf16.msra.mxu1 %v685_v19  ;;  %v647_v20 = vpop.f32.mrb[12].mxu0  ;;  %1374 = vmatprep.mubr.msk.bf16.mxu1 %vm1627_vm1, %v1626_v0 }
 0x372   : > { %v1370_v21 = vpop.f32.mrb[13].mxu0  ;;  %v654_v22 = vsel %vm422_vm2, %v647_v20, -inf  ;;  %1384 = vmatprep.subr.bf16.mxu1 %v1626_v0 }
 0x373   : > { %655 = vmax.xlane.f32.xlu0 %v654_v22  ;;  %v650_v23 = vpop.f32.mrb[14].mxu0 }
 0x374   : > { %v1371_v24 = vpop.f32.mrb[15].mxu0  ;;  %v657_v25 = vsel %vm422_vm2, %v650_v23, -inf }
 0x377   : > { %658 = vmax.xlane.f32.xlu0 %v657_v25 }
 0x38d   : > { %791 = vrot.lane.b32.xlu0 %v1801_v27, %s1629_s17 }
 0x400   : > { %v656_v26 = vpop.xlane.xlu0 %655 }
 0x401   : > { %v660_v28 = vsub.f32 %v647_v20, %v656_v26  ;;  %v672_v53 = vsub.f32 0.0, %v656_v26 }
 0x403   : > { %v662_v29 = vmul.f32 1.442695, %v660_v28  ;;  %v674_v55 = vmul.f32 1.442695, %v672_v53 }
 0x404   : > { %v659_v31 = vpop.xlane.xlu0 %658 }
 0x405   : > { %1491 = vpow2.f32 %v662_v29  ;;  %v661_v32 = vsub.f32 %v650_v23, %v659_v31  ;;  %v673_v54 = vsub.f32 0.0, %v659_v31 }
 0x407   : > { %v664_v33 = vmul.f32 1.442695, %v661_v32  ;;  %v676_v56 = vmul.f32 1.442695, %v673_v54 }
 0x408   : > { %v792_v37 = vpop.permute.xlu0 %791 }
 0x409   : > { %1493 = vpow2.f32 %v664_v33  ;;  %v797_v40 = vsel %vm422_vm2, %v792_v37, 0 }
 0x40a   : > { %1495 = vpow2.f32 %v674_v55 }
 0x40b   : > { %1497 = vpow2.f32 %v676_v56 }
 0x40f   : > { %v1492_v34 = vpop.eup %1491 }
 0x410   : > { %v666_v35 = vsel %vm422_vm2, %v1492_v34, 0.0 }
 0x411   : > { %667 = vadd.xlane.f32.xlu0 %v666_v35 }
 0x413   : > { %v1494_v36 = vpop.eup %1493 }
 0x414   : > { %v669_v38 = vsel %vm422_vm2, %v1494_v36, 0.0  ;;  %v682_v39 = vpack.c.bf16 %v1494_v36, %v1492_v34  ;;  %v1496_v57 = vpop.eup %1495 }
 0x415   : > { %670 = vadd.xlane.f32.xlu1 %v669_v38  ;;  %v1498_v58 = vpop.eup %1497  ;;  %v678_v60 = vmul.f32 8.0, %v1496_v57 }
 0x416   : > { %1375 = vmatmul.mubr.msk.bf16.vlgmr.msra.gmra.mrb[12].mxu1 %vm422_vm2, %v682_v39  ;;  %v679_v63 = vmul.f32 8.0, %v1498_v58 }
 0x417   : > { %1385 = vmatpush3.bf16.xpose.msra.mxu1 %v797_v40  ;;  %1386 = vmatprep.mubr.msk.bf16.mxu1 %vm1627_vm1, %v1626_v0 }
 0x418   : > { %1396 = vmatprep.subr.bf16.mxu1 %v1626_v0 }
 0x41e   : > { %1387 = vmatmul.mubr.msk.bf16.vlgmr.msra.gmra.mrb[16].mxu1 %vm422_vm2, %v790_v41  ;;  %v923_v41 = vld [vmem:[%s1985_s4 + $0x20] sm:$0xff] }
 0x41f   : > { %1398 = vmatprep.mubr.msk.bf16.mxu1 %vm1627_vm1, %v1626_v0 }
 0x426   : > { %976 = vrot.lane.b32.xlu1 %v1801_v27, %s1630_s28  ;;  %v739_v27 = vld [vmem:[%s1985_s4 + $0x18] sm:$0xff] }
 0x427   : > { %v740_v52 = vpack.c.bf16 %v739_v27, %v738_v51 }
 0x429   : > { %1379 = vmatpush3.bf16.msra.mxu0 %v740_v52 }
 0x42a   : > { %1390 = vmatprep.subr.bf16.mxu0 %v1626_v0 }
 0x443   : > { %v590_v44 = vpop.f32.mrb[8].mxu1 }
 0x444   : > { %v597_v46 = vadd.f32 %v590_v44, %v547_v43  ;;  %v1364_v47 = vpop.f32.mrb[9].mxu1  ;;  %v924_v43 = vld [vmem:[%s1985_s4 + $0x28] sm:$0xff] }
 0x445   : > { %v593_v48 = vpop.f32.mrb[10].mxu1  ;;  %v925_v44 = vpack.c.bf16 %v924_v43, %v923_v41 }
 0x446   : > { %599 = vst.msk [vmem:[#allocation2] sm:$0xff] %vm278_vm0, %v597_v46  ;;  %v598_v49 = vadd.f32 %v593_v48, %v548_v45  ;;  %v1365_v50 = vpop.f32.mrb[11].mxu1 }
 0x447   : > { %1397 = vmatpush3.bf16.msra.mxu1 %v925_v44 }
 0x448   : > { %600 = vst.msk [vmem:[#allocation2 + $0x8] sm:$0xff] %vm278_vm0, %v598_v49  ;;  %1408 = vmatprep.subr.bf16.mxu1 %v1626_v0 }
 0x44d   : > { %v735_v33 = vld [vmem:[#allocation2] sm:$0xff] }
 0x44f   : > { %v736_v37 = vld [vmem:[#allocation2 + $0x8] sm:$0xff] }
 0x49e   : > { %v668_v59 = vpop.xlane.xlu0 %667 }
 0x49f   : > { %v680_v62 = vsub.f32 %v668_v59, %v678_v60 }
 0x4a1   : > { %1499 = vrcp.f32 %v680_v62 }
 0x4a2   : > { %v671_v61 = vpop.xlane.xlu1 %670 }
 0x4a3   : > { %v681_v1 = vsub.f32 %v671_v61, %v679_v63 }
 0x4a5   : > { %1501 = vrcp.f32 %v681_v1 }
 0x4a6   : > { %v977_v28 = vpop.permute.xlu1 %976 }
 0x4a7   : > { %v982_v31 = vsel %vm422_vm2, %v977_v28, 0  ;;  %v1109_v28 = vld [vmem:[%s1985_s4 + $0x38] sm:$0xff] }
 0x4ab   : > { %v1500_v2 = vpop.eup %1499 }
 0x4af   : > { %v1502_v6 = vpop.eup %1501 }
 0x4e9   : > { %v724_v3 = vpop.f32.mrb[12].mxu1 }
 0x4ea   : > { %v733_v4 = vmul.f32 %v1500_v2, %v724_v3  ;;  %v1376_v5 = vpop.f32.mrb[13].mxu1 }
 0x4eb   : > { %v727_v7 = vpop.f32.mrb[14].mxu1 }
 0x4ec   : > { %v734_v8 = vmul.f32 %v1502_v6, %v727_v7  ;;  %v1377_v9 = vpop.f32.mrb[15].mxu1 }
 0x4ee   : > { %v737_v10 = vpack.c.bf16 %v734_v8, %v733_v4 }
 0x4f0   : > { %1381 = vmatmul.mubr.msk.bf16.vlgmr.msra.gmra.mrb[16].mxu0 %vm422_vm2, %v737_v10 }
 0x4f1   : > { %v833_v11 = vpop.f32.mrb[16].mxu1  ;;  %1392 = vmatprep.mubr.msk.bf16.mxu0 %vm1627_vm1, %v1626_v0 }
 0x4f2   : > { %v1388_v12 = vpop.f32.mrb[17].mxu1  ;;  %v840_v13 = vsel %vm422_vm2, %v833_v11, -inf }
 0x4f3   : > { %841 = vmax.xlane.f32.xlu0 %v840_v13  ;;  %v836_v14 = vpop.f32.mrb[18].mxu1 }
 0x4f4   : > { %v1389_v15 = vpop.f32.mrb[19].mxu1  ;;  %v843_v16 = vsel %vm422_vm2, %v836_v14, -inf }
 0x4f7   : > { %844 = vmax.xlane.f32.xlu0 %v843_v16 }
 0x50d   : > { %869 = vrot.lane.b32.xlu0 %v1822_v42, %s1629_s17  ;;  %s1559_s17 = sshll.u32 %s1631_s16, 4  ;;  %s1560_s17 = int_to_ptr.vmem [resolvable:$false] %s1559_s17 }
 0x50e   : > { %s1561_s18 = scalar_lea.vmem %s1560_s17, 512  ;;  %p1562_p2 = scmp.lt.s32.totalorder %s1936_s11, %s1560_s17 }
 0x50f   : > { %p1563_p3 = scmp.lt.s32.totalorder %s1561_s18, %s1555_s15 }
 0x511   : > { %974 = vrot.lane.b32.xlu0 %v1804_v30, %s1630_s28  ;;  %p1564_p4 = por %p1563_p3, %p1562_p2 }
 0x513   : > { %p1565_p7 = pnand %p1564_p4, %p1558_p12 }
 0x580   : > { %v842_v17 = vpop.xlane.xlu0 %841 }
 0x581   : > { %v846_v18 = vsub.f32 %v833_v11, %v842_v17  ;;  %v858_v45 = vsub.f32 0.0, %v842_v17 }
 0x583   : > { %v848_v19 = vmul.f32 1.442695, %v846_v18  ;;  %v860_v47 = vmul.f32 1.442695, %v858_v45 }
 0x584   : > { %v845_v20 = vpop.xlane.xlu0 %844 }
 0x585   : > { %1503 = vpow2.f32 %v848_v19  ;;  %v847_v21 = vsub.f32 %v836_v14, %v845_v20  ;;  %v859_v46 = vsub.f32 0.0, %v845_v20 }
 0x587   : > { %v850_v22 = vmul.f32 1.442695, %v847_v21  ;;  %v862_v48 = vmul.f32 1.442695, %v859_v46 }
 0x588   : > { %v870_v23 = vpop.permute.xlu0 %869 }
 0x589   : > { %1505 = vpow2.f32 %v850_v22  ;;  %1391 = vmatpush3.bf16.msra.mxu0 %v870_v23 }
 0x58a   : > { %1402 = vmatprep.subr.bf16.mxu0 %v1626_v0  ;;  %1507 = vpow2.f32 %v860_v47 }
 0x58b   : > { %1509 = vpow2.f32 %v862_v48 }
 0x58c   : > { %v975_v32 = vpop.permute.xlu0 %974 }
 0x58f   : > { %v1504_v24 = vpop.eup %1503 }
 0x590   : > { %v852_v25 = vsel %vm422_vm2, %v1504_v24, 0.0 }
 0x591   : > { %853 = vadd.xlane.f32.xlu0 %v852_v25 }
 0x593   : > { %v1506_v26 = vpop.eup %1505 }
 0x594   : > { %v855_v30 = vsel %vm422_vm2, %v1506_v26, 0.0  ;;  %v868_v29 = vpack.c.bf16 %v1506_v26, %v1504_v24  ;;  %v1508_v49 = vpop.eup %1507  ;;  %v1108_v26 = vld [vmem:[%s1985_s4 + $0x30] sm:$0xff] }
 0x595   : > { %856 = vadd.xlane.f32.xlu1 %v855_v30  ;;  %v1510_v50 = vpop.eup %1509  ;;  %v864_v27 = vmul.f32 8.0, %v1508_v49  ;;  %v1110_v30 = vpack.c.bf16 %v1109_v28, %v1108_v26 }
 0x596   : > { %1393 = vmatmul.mubr.msk.bf16.vlgmr.msra.gmra.mrb[20].mxu0 %vm422_vm2, %v868_v29  ;;  %v865_v54 = vmul.f32 8.0, %v1510_v50 }
 0x597   : > { %1403 = vmatpush3.bf16.xpose.msra.mxu0 %v982_v31  ;;  %1404 = vmatprep.mubr.msk.bf16.mxu0 %vm1627_vm1, %v1626_v0 }
 0x598   : > { %1414 = vmatprep.subr.bf16.mxu0 %v1626_v0 }
 0x59e   : > { %1405 = vmatmul.mubr.msk.bf16.vlgmr.msra.gmra.mrb[24].mxu0 %vm422_vm2, %v975_v32 }
 0x59f   : > { %1416 = vmatprep.mubr.msk.bf16.mxu0 %vm1627_vm1, %v1626_v0  ;;  %1415 = vmatpush3.bf16.msra.mxu0 %v1110_v30 }
 0x5c3   : > { %v778_v34 = vpop.f32.mrb[16].mxu0 }
 0x5c4   : > { %v785_v35 = vadd.f32 %v778_v34, %v735_v33  ;;  %v1382_v36 = vpop.f32.mrb[17].mxu0 }
 0x5c5   : > { %v781_v38 = vpop.f32.mrb[18].mxu0 }
 0x5c6   : > { %787 = vst.msk [vmem:[#allocation2] sm:$0xff] %vm278_vm0, %v785_v35  ;;  %v786_v39 = vadd.f32 %v781_v38, %v736_v37  ;;  %v1383_v40 = vpop.f32.mrb[19].mxu0 }
 0x5c8   : > { %788 = vst.msk [vmem:[#allocation2 + $0x8] sm:$0xff] %vm278_vm0, %v786_v39 }
 0x5cf   : > { %v921_v22 = vld [vmem:[#allocation2 + $0x8] sm:$0xff] }
 0x61e   : > { %v854_v51 = vpop.xlane.xlu0 %853 }
 0x61f   : > { %v866_v53 = vsub.f32 %v854_v51, %v864_v27 }
 0x621   : > { %1511 = vrcp.f32 %v866_v53 }
 0x622   : > { %v857_v52 = vpop.xlane.xlu1 %856 }
 0x623   : > { %v867_v55 = vsub.f32 %v857_v52, %v865_v54 }
 0x625   : > { %1513 = vrcp.f32 %v867_v55 }
 0x62b   : > { %v1512_v56 = vpop.eup %1511 }
 0x62f   : > { %v1514_v60 = vpop.eup %1513 }
 0x669   : > { %v909_v57 = vpop.f32.mrb[20].mxu0 }
 0x66a   : > { %v918_v58 = vmul.f32 %v1512_v56, %v909_v57  ;;  %v1394_v59 = vpop.f32.mrb[21].mxu0 }
 0x66b   : > { %v912_v61 = vpop.f32.mrb[22].mxu0  ;;  %v1284_v59 = vld [vmem:[%s1986_s5] ss:$0 sm:$0xff] }
 0x66c   : > { %v919_v62 = vmul.f32 %v1514_v60, %v912_v61  ;;  %v1395_v63 = vpop.f32.mrb[23].mxu0 }
 0x66e   : > { %v922_v1 = vpack.c.bf16 %v919_v62, %v918_v58 }
 0x670   : > { %1399 = vmatmul.mubr.msk.bf16.vlgmr.msra.gmra.mrb[20].mxu1 %vm422_vm2, %v922_v1 }
 0x671   : > { %v1018_v2 = vpop.f32.mrb[24].mxu0  ;;  %1410 = vmatprep.mubr.msk.bf16.mxu1 %vm1627_vm1, %v1626_v0 }
 0x672   : > { %v1406_v3 = vpop.f32.mrb[25].mxu0  ;;  %v1025_v4 = vsel %vm422_vm2, %v1018_v2, -inf }
 0x673   : > { %1026 = vmax.xlane.f32.xlu0 %v1025_v4  ;;  %v1021_v5 = vpop.f32.mrb[26].mxu0 }
 0x674   : > { %v1407_v6 = vpop.f32.mrb[27].mxu0  ;;  %v1028_v7 = vsel %vm422_vm2, %v1021_v5, -inf }
 0x677   : > { %1029 = vmax.xlane.f32.xlu0 %v1028_v7 }
 0x68d   : > { %1054 = vrot.lane.b32.xlu0 %v1822_v42, %s1630_s28  ;;  %v920_v42 = vld [vmem:[#allocation2] sm:$0xff] }
 0x700   : > { %v1027_v8 = vpop.xlane.xlu0 %1026 }
 0x701   : > { %v1031_v9 = vsub.f32 %v1018_v2, %v1027_v8  ;;  %v1043_v29 = vsub.f32 0.0, %v1027_v8 }
 0x703   : > { %v1033_v10 = vmul.f32 1.442695, %v1031_v9  ;;  %v1045_v32 = vmul.f32 1.442695, %v1043_v29 }
 0x704   : > { %v1030_v11 = vpop.xlane.xlu0 %1029 }
 0x705   : > { %1515 = vpow2.f32 %v1033_v10  ;;  %v1032_v12 = vsub.f32 %v1021_v5, %v1030_v11  ;;  %v1044_v31 = vsub.f32 0.0, %v1030_v11 }
 0x707   : > { %v1035_v13 = vmul.f32 1.442695, %v1032_v12  ;;  %v1047_v33 = vmul.f32 1.442695, %v1044_v31 }
 0x708   : > { %v1055_v0 = vpop.permute.xlu0 %1054 }
 0x709   : > { %1517 = vpow2.f32 %v1035_v13  ;;  %1409 = vmatpush3.bf16.msra.mxu1 %v1055_v0 }
 0x70a   : > { %1519 = vpow2.f32 %v1045_v32 }
 0x70b   : > { %1521 = vpow2.f32 %v1047_v33 }
 0x70f   : > { %v1516_v14 = vpop.eup %1515 }
 0x710   : > { %v1037_v15 = vsel %vm422_vm2, %v1516_v14, 0.0 }
 0x711   : > { %1038 = vadd.xlane.f32.xlu1 %v1037_v15 }
 0x713   : > { %v1518_v16 = vpop.eup %1517 }
 0x714   : > { %v1040_v17 = vsel %vm422_vm2, %v1518_v16, 0.0  ;;  %v1053_v18 = vpack.c.bf16 %v1518_v16, %v1516_v14  ;;  %v1520_v35 = vpop.eup %1519 }
 0x715   : > { %1041 = vadd.xlane.f32.xlu1 %v1040_v17  ;;  %v1522_v36 = vpop.eup %1521  ;;  %v1049_v37 = vmul.f32 8.0, %v1520_v35 }
 0x716   : > { %1411 = vmatmul.mubr.msk.bf16.vlgmr.msra.gmra.mrb[24].mxu1 %vm422_vm2, %v1053_v18  ;;  %v1050_v40 = vmul.f32 8.0, %v1522_v36 }
 0x743   : > { %v963_v19 = vpop.f32.mrb[20].mxu1 }
 0x744   : > { %v970_v20 = vadd.f32 %v963_v19, %v920_v42  ;;  %v1400_v21 = vpop.f32.mrb[21].mxu1 }
 0x745   : > { %v966_v23 = vpop.f32.mrb[22].mxu1 }
 0x746   : > { %972 = vst.msk [vmem:[#allocation2] sm:$0xff] %vm278_vm0, %v970_v20  ;;  %v971_v24 = vadd.f32 %v966_v23, %v921_v22  ;;  %v1401_v25 = vpop.f32.mrb[23].mxu1 }
 0x748   : > { %973 = vst.msk [vmem:[#allocation2 + $0x8] sm:$0xff] %vm278_vm0, %v971_v24 }
 0x74d   : > { %v1105_v27 = vld [vmem:[#allocation2] sm:$0xff] }
 0x74f   : > { %v1106_v55 = vld [vmem:[#allocation2 + $0x8] sm:$0xff] }
 0x79e   : > { %v1039_v34 = vpop.xlane.xlu1 %1038 }
 0x79f   : > { %v1051_v39 = vsub.f32 %v1039_v34, %v1049_v37 }
 0x7a1   : > { %1523 = vrcp.f32 %v1051_v39 }
 0x7a2   : > { %v1042_v38 = vpop.xlane.xlu1 %1041 }
 0x7a3   : > { %v1052_v41 = vsub.f32 %v1042_v38, %v1050_v40 }
 0x7a5   : > { %1525 = vrcp.f32 %v1052_v41 }
 0x7ab   : > { %v1524_v43 = vpop.eup %1523 }
 0x7af   : > { %v1526_v47 = vpop.eup %1525 }
 0x7e9   : > { %v1094_v44 = vpop.f32.mrb[24].mxu1 }
 0x7ea   : > { %v1103_v45 = vmul.f32 %v1524_v43, %v1094_v44  ;;  %v1412_v46 = vpop.f32.mrb[25].mxu1 }
 0x7eb   : > { %v1097_v48 = vpop.f32.mrb[26].mxu1 }
 0x7ec   : > { %v1104_v49 = vmul.f32 %v1526_v47, %v1097_v48  ;;  %v1413_v50 = vpop.f32.mrb[27].mxu1 }
 0x7ee   : > { %v1107_v51 = vpack.c.bf16 %v1104_v49, %v1103_v45 }
 0x7f0   : > { %1417 = vmatmul.mubr.msk.bf16.vlgmr.msra.gmra.mrb[28].mxu0 %vm422_vm2, %v1107_v51 }
 0x8c3   : > { %v1148_v52 = vpop.f32.mrb[28].mxu0 }
 0x8c4   : > { %v1155_v53 = vadd.f32 %v1148_v52, %v1105_v27  ;;  %v1418_v54 = vpop.f32.mrb[29].mxu0 }
 0x8c5   : > { %v1151_v56 = vpop.f32.mrb[30].mxu0 }
 0x8c6   : > { %1157 = vst.msk [vmem:[#allocation2] sm:$0xff] %vm278_vm0, %v1155_v53  ;;  %v1156_v57 = vadd.f32 %v1151_v56, %v1106_v55  ;;  %v1419_v58 = vpop.f32.mrb[31].mxu0 }
 0x8c8   : > { %1158 = vst.msk [vmem:[#allocation2 + $0x8] sm:$0xff] %vm278_vm0, %v1156_v57 }
 0x8cd   : > { %v1159_v60 = vld [vmem:[#allocation2] sm:$0xff] }
 0x8ce   : > { %v1168_v61 = vadd.f32 %v1284_v59, %v1159_v60 }
 0x8cf   : > { %v1160_v62 = vld [vmem:[#allocation2 + $0x8] sm:$0xff] }
 0x8d0   : > { %v1169_v63 = vadd.f32 %v1284_v59, %v1160_v62  ;;  %1170 = vst.msk [vmem:[%s260_s13] sm:$0xff] %vm278_vm0, %v1168_v61 }
 0x8d2   : > { %1171 = vst.msk [vmem:[%s260_s13 + $0x8] sm:$0xff] %vm278_vm0, %v1169_v63 }
 0x8d3   : > { %1568 = shalt.err (!%p1565_p7)
}
 0x8d4   : > { %s1569_s19 = scalar_lea.hbm %s1934_s9, 256  ;;  %s1573_s28 = scalar_lea.hbm %s1987_s6, 512 }
 0x8d5   : > { %p1570_p8 = scmp.ne.s32.totalorder %s1934_s9, %s1569_s19  ;;  %p1574_p1 = scmp.lt.u32.totalorder %s1934_s9, %s1987_s6 }
 0x8d6   : > { %p1575_p0 = scmp.lt.u32.totalorder %s1573_s28, %s1569_s19  ;;  %p1577_p6 = scmp.lt.u32.totalorder %s1569_s19, %s1934_s9 }
 0x8d7   : > { %p1571_p11 = pnand %p1570_p8, %p1998_p9 }
 0x8d8   : > { %p1576_p5 = por %p1575_p0, %p1574_p1 }
 0x8d9   : > { %p1572_p13 = pneg %p1571_p11 }
 0x8da   : > { %p1578_p10 = por %p1577_p6, %p1576_p5 }
 0x8dc   : > { %p1579_p12 = pnand %p1578_p10, %p1572_p13 }
 0x8de   : > { %1582 = shalt.err (!%p1579_p12)
}
 0x8df   : > { %s1632_s13 = smov 128   ;;  %s1633_s12 = smov 8  }
 0x8e0   : > { %1424 = dma.vmem_to_hbm [thread:$0]  (%p1998_p9), %s1936_s11, 256, %s1934_s9, %s1940_s25, %s1632_s13, %s1632_s13, %s1633_s12  }
 0x8e1 PF: > { %p1436_p2 = scmp.ge.s32.totalorder %s1621_s24, 2  ;;  %s1201_s14 = sand.u32 1, %s1609_s21  }
 0x8e2   : > { %p1999_p3 = scmp.ne.s32.totalorder %s1992_s8, 0  ;;  %s1202_s15 = scalar_lea.sflag [#allocation5], %s1201_s14 }
 0x8e4   : > { %p1431_p4 = pnand %p1436_p2, %p1999_p3 }
 0x8e6   : > { %1604 = dma.done.wait (!%p1431_p4), %s1202_s15, 256  }
 0x8e7   : > { %1606 = vsyncadd (!%p1431_p4), %s1202_s15, 4294967040  ;;  %p17_p7 = scmp.ge.s32.totalorder %s1694_s27, 4   ;;  %s2000_s21 = smov %s1613_s22 }
 0x8e8   : > { %s2001_s22 = smov %s1617_s23  ;;  %s2002_s23 = smov %s1705_s30 }
 0x8e9   : > { %s2003_s24 = smov %s1694_s27  ;;  %19 = sbr.rel (!%p17_p7) target bundleno = 4 (0x4), region = 84 }
 0x8f0   :  { %1207 = vsyncpa [#allocation4], 1 }
 0x8f1   :  { %1209 = vsyncpa [#allocation4 + $0x1], 1 }
 0x8f2   :  { %1210 = vsyncpa [#allocation5], 1 }
 0x8f3   :  { %1212 = vsyncpa [#allocation5 + $0x1], 1 }

</bundles_post_ra>
